<compile_context>
chip_gen: v5e
topology: v5e:2x2
jax: 0.10.0
libtpu: 0.0.40
codegen_flags: <defaults>
</compile_context>

<pallas_src>
import functools

import jax
import jax.numpy as jnp
from jax.experimental import pallas as pl
from jax.experimental.pallas import tpu as pltpu


def _round_up(x, m):
    return (x + m - 1) // m * m


# --------------------------- fused Pallas kernel ------------------------------

def _mapper_fused_kernel(p_ref, wc_ref, wl_ref, beff_ref, o_ref, acc_ref, *,
                         ksz, Dc, Hc, Wc):
    """Conv3d (K-tiled matmul accumulate) + MaxPool3d + Linear epilogue.

    p_ref   : (1, P1, TK)        bf16  im2col patches tile for this batch / K-tile
    wc_ref  : (TK, Co_pad)       bf16  conv weight tile
    wl_ref  : (S, Co_pad, Do_pad) f32  linear weight, W[s, c, o] = w_lin[o, c*S+s]
    beff_ref: (1, Do_pad)        f32  linear bias with the conv bias folded in
    o_ref   : (1, 1, Do_pad)     f32  output row for this batch element
    acc_ref : (P1, Co_pad)       f32  VMEM-resident conv accumulator
    """
    kstep = pl.program_id(1)

    # ---- init the f32 accumulator on the first K tile ------------------------
    @pl.when(kstep == 0)
    def _():
        acc_ref[...] = jnp.zeros_like(acc_ref)

    # ---- conv partial product: (P1, TK) @ (TK, Co_pad), bf16 in / f32 acc ----
    acc_ref[...] += jnp.dot(p_ref[0], wc_ref[...],
                            preferred_element_type=jnp.float32)

    # ---- epilogue on the last K tile: maxpool + linear, all VMEM-resident ----
    @pl.when(kstep == pl.num_programs(1) - 1)
    def _():
        conv = acc_ref[...]                        # (P1, Co_pad) f32, in VMEM
        Dp, Hp, Wp = Dc - ksz + 1, Hc - ksz + 1, Wc - ksz + 1
        out = beff_ref[...]                        # (1, Do_pad) effective bias
        s = 0
        # Static Python loops: S = Dp*Hp*Wp is forced small by the module's
        # Flatten-dim == embedding_size invariant.  MaxPool(stride=1) is a
        # chain of pairwise VPU maxima over k^3 shifted row views of the
        # VMEM-resident conv tile — no pool-window tensor is materialized.
        for dp in range(Dp):
            for hp in range(Hp):
                for wp in range(Wp):
                    pooled = None
                    for kd in range(ksz):
                        for kh in range(ksz):
                            for kw in range(ksz):
                                r = (dp + kd) * (Hc * Wc) + (hp + kh) * Wc + (wp + kw)
                                v = conv[r:r + 1, :]          # (1, Co_pad)
                                pooled = v if pooled is None else jnp.maximum(pooled, v)
                    # Linear contribution of this spatial position:
                    # (1, Co_pad) @ (Co_pad, Do_pad), f32.
                    out = out + jnp.dot(pooled, wl_ref[s],
                                        preferred_element_type=jnp.float32)
                    s += 1
        o_ref[0] = out


# ------------------------------ JAX glue --------------------------------------

def _im2col_3d(x, k, pad):
    # x: (N, Cin, D, H, W) -> (N, Dc*Hc*Wc, Cin*k^3); K ordering matches the
    # PyTorch weight flattening (Cin outer, then kd, kh, kw) and K is the
    # lane-major (last) axis.  Built channels-last so the expanded tensor is
    # written once in its final layout.
    N, C, D, H, W = x.shape
    xp = jnp.pad(x, ((0, 0), (0, 0), (pad, pad), (pad, pad), (pad, pad)))
    xp = xp.transpose(0, 2, 3, 4, 1)                      # (N, D', H', W', C)
    Dc, Hc, Wc = D + 2 * pad - k + 1, H + 2 * pad - k + 1, W + 2 * pad - k + 1
    cols = []
    for kd in range(k):
        for kh in range(k):
            for kw in range(k):
                cols.append(xp[:, kd:kd + Dc, kh:kh + Hc, kw:kw + Wc, :])
    p = jnp.stack(cols, axis=-1)                          # (N, Dc, Hc, Wc, C, k^3)
    return p.reshape(N, Dc * Hc * Wc, C * k ** 3), (Dc, Hc, Wc)


@functools.partial(jax.jit, static_argnames=("kernel_size", "tk_max"))
def mapper_forward(x, w_conv, b_conv, w_lin, b_lin, kernel_size, tk_max=512):
    # x: (N, Cin, D, H, W) float32, NCDHW (PyTorch layout)
    N, Cin, D, H, W = x.shape
    Co = w_conv.shape[0]          # conv out-channels == dim_size
    Do = w_lin.shape[0]           # linear out-features == dim_size
    k = kernel_size
    pad = k // 2

    patches, (Dc, Hc, Wc) = _im2col_3d(x, k, pad)         # (N, P1, K)
    P1 = Dc * Hc * Wc
    K = Cin * k ** 3
    Dp, Hp, Wp = Dc - k + 1, Hc - k + 1, Wc - k + 1
    S = Dp * Hp * Wp
    assert Co * S == w_lin.shape[1], (
        "Flatten output dim must equal Linear in_features (embedding_size), "
        f"got {Co * S} vs {w_lin.shape[1]}")

    # ---- lane-dense / MXU-friendly padded sizes ------------------------------
    Co_pad = _round_up(Co, 128)
    Do_pad = _round_up(Do, 128)
    K_pad = _round_up(K, 128)
    TK = min(tk_max, K_pad)              # K tile (multiple of 128); budget vs VMEM
    K_pad = _round_up(K_pad, TK)
    nk = K_pad // TK

    # im2col patches: zero-pad K, cast to bf16 for the MXU.
    patches = jnp.pad(patches, ((0, 0), (0, 0), (0, K_pad - K))).astype(jnp.bfloat16)

    # Conv weight as (K_pad, Co_pad) bf16 matrix (zero padded).
    wc = w_conv.reshape(Co, K).T
    wc = jnp.pad(wc, ((0, K_pad - K), (0, Co_pad - Co))).astype(jnp.bfloat16)

    # Linear weight reorganised so the kernel contracts (spatial s, channel c):
    #   W[s, c, o] = w_lin[o, c*S + s]     (PyTorch Flatten order is c*S + s)
    wl = w_lin.reshape(Do, Co, S).transpose(2, 1, 0)      # (S, Co, Do) f32
    # Fold the conv bias into an effective linear bias (exact: max-pool commutes
    # with a per-channel additive constant, Linear is affine).  Removes the
    # per-step bias DMA/broadcast from the kernel entirely.
    beff = b_lin + jnp.einsum("c,sco->o", b_conv, wl)
    wl = jnp.pad(wl, ((0, 0), (0, Co_pad - Co), (0, Do_pad - Do))).astype(jnp.float32)
    beff = jnp.pad(beff, (0, Do_pad - Do)).reshape(1, Do_pad).astype(jnp.float32)

    kernel = functools.partial(_mapper_fused_kernel, ksz=k, Dc=Dc, Hc=Hc, Wc=Wc)

    flops = 2 * N * P1 * K_pad * Co_pad + 2 * N * S * Co_pad * Do_pad
    bytes_accessed = (patches.size * 2 + wc.size * 2 + wl.size * 4
                      + beff.size * 4 + N * Do_pad * 4)

    out = pl.pallas_call(
        kernel,
        out_shape=jax.ShapeDtypeStruct((N, 1, Do_pad), jnp.float32),
        grid_spec=pltpu.PrefetchScalarGridSpec(
            num_scalar_prefetch=0,
            grid=(N, nk),                                   # (batch, K tiles)
            in_specs=[
                pl.BlockSpec((1, P1, TK), lambda n, kk: (n, 0, kk)),       # patches
                pl.BlockSpec((TK, Co_pad), lambda n, kk: (kk, 0)),         # conv W
                pl.BlockSpec((S, Co_pad, Do_pad), lambda n, kk: (0, 0, 0)),  # lin W
                pl.BlockSpec((1, Do_pad), lambda n, kk: (0, 0)),           # eff bias
            ],
            out_specs=pl.BlockSpec((1, 1, Do_pad), lambda n, kk: (n, 0, 0)),
            scratch_shapes=[pltpu.VMEM((P1, Co_pad), jnp.float32)],
        ),
        compiler_params=pltpu.CompilerParams(
            dimension_semantics=("parallel", "arbitrary"),
            vmem_limit_bytes=32 * 1024 * 1024,
        ),
        cost_estimate=pl.CostEstimate(
            flops=flops, transcendentals=0, bytes_accessed=bytes_accessed),
    )(patches, wc, wl, beff)

    # Drop the lane padding; (N, dim_size) float32.
    return out[:, 0, :Do]


# ------------------------------ main -------------------------------------------

if __name__ == "__main__":
    # Shapes implied by the module: Flatten dim = dim_size * (D-2)^3 must equal
    # embedding_size (k=3, padding=1).  32 = 4 * 2^3 with D=H=W=4.
    embedding_size, dim_size, kernel_size, stride = 32, 4, 3, 2  # stride unused (spec)
    N, D, H, W = 2, 4, 4, 4

    key = jax.random.PRNGKey(0)
    kx, kwc, kbc, kwl, kbl = jax.random.split(key, 5)
    x = jax.random.normal(kx, (N, embedding_size, D, H, W), jnp.float32)
    w_conv = 0.1 * jax.random.normal(
        kwc, (dim_size, embedding_size, kernel_size, kernel_size, kernel_size),
        jnp.float32)
    b_conv = 0.1 * jax.random.normal(kbc, (dim_size,), jnp.float32)
    w_lin = 0.1 * jax.random.normal(kwl, (dim_size, embedding_size), jnp.float32)
    b_lin = 0.1 * jax.random.normal(kbl, (dim_size,), jnp.float32)

    out = mapper_forward(x, w_conv, b_conv, w_lin, b_lin, kernel_size)
    out = jax.block_until_ready(out)

    # Pure-JAX f32 reference.
    pad = kernel_size // 2
    ref_conv = jax.lax.conv_general_dilated(
        x, w_conv, (1, 1, 1), [(pad, pad)] * 3,
        dimension_numbers=("NCDHW", "OIDHW", "NCDHW"),
    ) + b_conv.reshape(1, -1, 1, 1, 1)
    ref_pool = jax.lax.reduce_window(
        ref_conv, -jnp.inf, jax.lax.max,
        (1, 1, kernel_size, kernel_size, kernel_size), (1, 1, 1, 1, 1), "VALID")
    ref_out = ref_pool.reshape(N, -1) @ w_lin.T + b_lin

    assert out.shape == (N, dim_size)
    # bf16 MXU inputs (f32 accumulation) => compare with bf16-appropriate tolerance.
    assert jnp.allclose(out, ref_out, atol=3e-2, rtol=2e-2), (out, ref_out)
    print("KERNEL_OK")
</pallas_src>

<mosaic_0001>
module attributes {stable_mosaic.version = 11 : i64} {
  func.func @_mapper_fused_kernel(%arg0: i32, %arg1: i32, %arg2: memref<1x64x512xbf16, #tpu.memory_space<vmem>>, %arg3: memref<512x128xbf16, #tpu.memory_space<vmem>>, %arg4: memref<8x128x128xf32, #tpu.memory_space<vmem>>, %arg5: memref<1x128xf32, #tpu.memory_space<vmem>>, %arg6: memref<1x1x128xf32, #tpu.memory_space<vmem>>, %arg7: memref<64x128xf32, #tpu.memory_space<vmem>>) attributes {dimension_semantics = [#tpu.dimension_semantics<parallel>, #tpu.dimension_semantics<arbitrary>], iteration_bounds = array<i64: 2, 2>, scalar_prefetch = 0 : i64, scratch_operands = 1 : i64, tpu.core_type = #tpu.core_type<tc>, window_params = [{transform_indices = @transform_0, window_bounds = array<i64: 1, 64, 512>}, {transform_indices = @transform_1, window_bounds = array<i64: 512, 128>}, {pipeline_mode = #tpu.pipeline_mode<synchronous>, transform_indices = @transform_2, window_bounds = array<i64: 8, 128, 128>}, {pipeline_mode = #tpu.pipeline_mode<synchronous>, transform_indices = @transform_3, window_bounds = array<i64: 1, 128>}, {transform_indices = @transform_4, window_bounds = array<i64: 1, 1, 128>}]} {
    %c0_i32 = arith.constant 0 : i32
    %0 = arith.cmpi eq, %arg1, %c0_i32 : i32
    %1 = arith.extui %0 : i1 to i32
    %c0_i32_0 = arith.constant 0 : i32
    %2 = arith.cmpi ne, %1, %c0_i32_0 : i32
    scf.if %2 {
      %cst_10 = arith.constant 0.000000e+00 : f32
      %13 = vector.broadcast %cst_10 : f32 to vector<64x128xf32>
      %c0_11 = arith.constant 0 : index
      %c0_12 = arith.constant 0 : index
      %14 = vector.load %arg7[%c0_11, %c0_12] : memref<64x128xf32, #tpu.memory_space<vmem>>, vector<64x128xf32>
      tpu.vector_store %arg7[%c0_11, %c0_12], %13 {strides = array<i32>} : memref<64x128xf32, #tpu.memory_space<vmem>>, vector<64x128xf32>,
    } else {
    }
    %c0 = arith.constant 0 : index
    %c0_1 = arith.constant 0 : index
    %3 = vector.load %arg7[%c0, %c0_1] : memref<64x128xf32, #tpu.memory_space<vmem>>, vector<64x128xf32>
    %c0_2 = arith.constant 0 : index
    %c0_3 = arith.constant 0 : index
    %c0_4 = arith.constant 0 : index
    %4 = vector.load %arg2[%c0_2, %c0_3, %c0_4] : memref<1x64x512xbf16, #tpu.memory_space<vmem>>, vector<1x64x512xbf16>
    %5 = vector.shape_cast %4 : vector<1x64x512xbf16> to vector<64x512xbf16>
    %c0_5 = arith.constant 0 : index
    %c0_6 = arith.constant 0 : index
    %6 = vector.load %arg3[%c0_5, %c0_6] : memref<512x128xbf16, #tpu.memory_space<vmem>>, vector<512x128xbf16>
    %cst = arith.constant dense<0.000000e+00> : vector<64x128xf32>
    %7 = tpu.matmul %5, %6, %cst {dimension_numbers = #tpu.dot_dimension_numbers<[1], [0], [0], [1], [0, 0, 1, 1], [], []>} : vector<64x512xbf16>, vector<512x128xbf16>, vector<64x128xf32> -> vector<64x128xf32>
    %8 = arith.addf %3, %7 : vector<64x128xf32>
    %c0_7 = arith.constant 0 : index
    %c0_8 = arith.constant 0 : index
    %9 = vector.load %arg7[%c0_7, %c0_8] : memref<64x128xf32, #tpu.memory_space<vmem>>, vector<64x128xf32>
    tpu.vector_store %arg7[%c0_7, %c0_8], %8 {strides = array<i32>} : memref<64x128xf32, #tpu.memory_space<vmem>>, vector<64x128xf32>,
    %c1_i32 = arith.constant 1 : i32
    %10 = arith.cmpi eq, %arg1, %c1_i32 : i32
    %11 = arith.extui %10 : i1 to i32
    %c0_i32_9 = arith.constant 0 : i32
    %12 = arith.cmpi ne, %11, %c0_i32_9 : i32
    scf.if %12 {
      %c0_10 = arith.constant 0 : index
      %c0_11 = arith.constant 0 : index
      %13 = vector.load %arg7[%c0_10, %c0_11] : memref<64x128xf32, #tpu.memory_space<vmem>>, vector<64x128xf32>
      %c0_12 = arith.constant 0 : index
      %c0_13 = arith.constant 0 : index
      %14 = vector.load %arg5[%c0_12, %c0_13] : memref<1x128xf32, #tpu.memory_space<vmem>>, vector<1x128xf32>
      %15 = vector.extract_strided_slice %13 {offsets = [0, 0], sizes = [1, 128], strides = [1, 1]} : vector<64x128xf32> to vector<1x128xf32>
      %16 = vector.extract_strided_slice %13 {offsets = [1, 0], sizes = [1, 128], strides = [1, 1]} : vector<64x128xf32> to vector<1x128xf32>
      %17 = arith.maximumf %15, %16 : vector<1x128xf32>
      %18 = vector.extract_strided_slice %13 {offsets = [2, 0], sizes = [1, 128], strides = [1, 1]} : vector<64x128xf32> to vector<1x128xf32>
      %19 = arith.maximumf %17, %18 : vector<1x128xf32>
      %20 = vector.extract_strided_slice %13 {offsets = [4, 0], sizes = [1, 128], strides = [1, 1]} : vector<64x128xf32> to vector<1x128xf32>
      %21 = arith.maximumf %19, %20 : vector<1x128xf32>
      %22 = vector.extract_strided_slice %13 {offsets = [5, 0], sizes = [1, 128], strides = [1, 1]} : vector<64x128xf32> to vector<1x128xf32>
      %23 = arith.maximumf %21, %22 : vector<1x128xf32>
      %24 = vector.extract_strided_slice %13 {offsets = [6, 0], sizes = [1, 128], strides = [1, 1]} : vector<64x128xf32> to vector<1x128xf32>
      %25 = arith.maximumf %23, %24 : vector<1x128xf32>
      %26 = vector.extract_strided_slice %13 {offsets = [8, 0], sizes = [1, 128], strides = [1, 1]} : vector<64x128xf32> to vector<1x128xf32>
      %27 = arith.maximumf %25, %26 : vector<1x128xf32>
      %28 = vector.extract_strided_slice %13 {offsets = [9, 0], sizes = [1, 128], strides = [1, 1]} : vector<64x128xf32> to vector<1x128xf32>
      %29 = arith.maximumf %27, %28 : vector<1x128xf32>
      %30 = vector.extract_strided_slice %13 {offsets = [10, 0], sizes = [1, 128], strides = [1, 1]} : vector<64x128xf32> to vector<1x128xf32>
      %31 = arith.maximumf %29, %30 : vector<1x128xf32>
      %32 = vector.extract_strided_slice %13 {offsets = [16, 0], sizes = [1, 128], strides = [1, 1]} : vector<64x128xf32> to vector<1x128xf32>
      %33 = arith.maximumf %31, %32 : vector<1x128xf32>
      %34 = vector.extract_strided_slice %13 {offsets = [17, 0], sizes = [1, 128], strides = [1, 1]} : vector<64x128xf32> to vector<1x128xf32>
      %35 = arith.maximumf %33, %34 : vector<1x128xf32>
      %36 = vector.extract_strided_slice %13 {offsets = [18, 0], sizes = [1, 128], strides = [1, 1]} : vector<64x128xf32> to vector<1x128xf32>
      %37 = arith.maximumf %35, %36 : vector<1x128xf32>
      %38 = vector.extract_strided_slice %13 {offsets = [20, 0], sizes = [1, 128], strides = [1, 1]} : vector<64x128xf32> to vector<1x128xf32>
      %39 = arith.maximumf %37, %38 : vector<1x128xf32>
      %40 = vector.extract_strided_slice %13 {offsets = [21, 0], sizes = [1, 128], strides = [1, 1]} : vector<64x128xf32> to vector<1x128xf32>
      %41 = arith.maximumf %39, %40 : vector<1x128xf32>
      %42 = vector.extract_strided_slice %13 {offsets = [22, 0], sizes = [1, 128], strides = [1, 1]} : vector<64x128xf32> to vector<1x128xf32>
      %43 = arith.maximumf %41, %42 : vector<1x128xf32>
      %44 = vector.extract_strided_slice %13 {offsets = [24, 0], sizes = [1, 128], strides = [1, 1]} : vector<64x128xf32> to vector<1x128xf32>
      %45 = arith.maximumf %43, %44 : vector<1x128xf32>
      %46 = vector.extract_strided_slice %13 {offsets = [25, 0], sizes = [1, 128], strides = [1, 1]} : vector<64x128xf32> to vector<1x128xf32>
      %47 = arith.maximumf %45, %46 : vector<1x128xf32>
      %48 = vector.extract_strided_slice %13 {offsets = [26, 0], sizes = [1, 128], strides = [1, 1]} : vector<64x128xf32> to vector<1x128xf32>
      %49 = arith.maximumf %47, %48 : vector<1x128xf32>
      %50 = vector.extract_strided_slice %13 {offsets = [32, 0], sizes = [1, 128], strides = [1, 1]} : vector<64x128xf32> to vector<1x128xf32>
      %51 = arith.maximumf %49, %50 : vector<1x128xf32>
      %52 = vector.extract_strided_slice %13 {offsets = [33, 0], sizes = [1, 128], strides = [1, 1]} : vector<64x128xf32> to vector<1x128xf32>
      %53 = arith.maximumf %51, %52 : vector<1x128xf32>
      %54 = vector.extract_strided_slice %13 {offsets = [34, 0], sizes = [1, 128], strides = [1, 1]} : vector<64x128xf32> to vector<1x128xf32>
      %55 = arith.maximumf %53, %54 : vector<1x128xf32>
      %56 = vector.extract_strided_slice %13 {offsets = [36, 0], sizes = [1, 128], strides = [1, 1]} : vector<64x128xf32> to vector<1x128xf32>
      %57 = arith.maximumf %55, %56 : vector<1x128xf32>
      %58 = vector.extract_strided_slice %13 {offsets = [37, 0], sizes = [1, 128], strides = [1, 1]} : vector<64x128xf32> to vector<1x128xf32>
      %59 = arith.maximumf %57, %58 : vector<1x128xf32>
      %60 = vector.extract_strided_slice %13 {offsets = [38, 0], sizes = [1, 128], strides = [1, 1]} : vector<64x128xf32> to vector<1x128xf32>
      %61 = arith.maximumf %59, %60 : vector<1x128xf32>
      %62 = vector.extract_strided_slice %13 {offsets = [40, 0], sizes = [1, 128], strides = [1, 1]} : vector<64x128xf32> to vector<1x128xf32>
      %63 = arith.maximumf %61, %62 : vector<1x128xf32>
      %64 = vector.extract_strided_slice %13 {offsets = [41, 0], sizes = [1, 128], strides = [1, 1]} : vector<64x128xf32> to vector<1x128xf32>
      %65 = arith.maximumf %63, %64 : vector<1x128xf32>
      %66 = vector.extract_strided_slice %13 {offsets = [42, 0], sizes = [1, 128], strides = [1, 1]} : vector<64x128xf32> to vector<1x128xf32>
      %67 = arith.maximumf %65, %66 : vector<1x128xf32>
      %c0_14 = arith.constant 0 : index
      %c0_15 = arith.constant 0 : index
      %c0_16 = arith.constant 0 : index
      %68 = vector.load %arg4[%c0_14, %c0_15, %c0_16] : memref<8x128x128xf32, #tpu.memory_space<vmem>>, vector<1x128x128xf32>
      %69 = vector.shape_cast %68 : vector<1x128x128xf32> to vector<128x128xf32>
      %cst_17 = arith.constant dense<0.000000e+00> : vector<1x128xf32>
      %70 = tpu.matmul %67, %69, %cst_17 {dimension_numbers = #tpu.dot_dimension_numbers<[1], [0], [0], [1], [0, 0, 1, 1], [], []>} : vector<1x128xf32>, vector<128x128xf32>, vector<1x128xf32> -> vector<1x128xf32>
      %71 = arith.addf %14, %70 : vector<1x128xf32>
      %72 = vector.extract_strided_slice %13 {offsets = [1, 0], sizes = [1, 128], strides = [1, 1]} : vector<64x128xf32> to vector<1x128xf32>
      %73 = vector.extract_strided_slice %13 {offsets = [2, 0], sizes = [1, 128], strides = [1, 1]} : vector<64x128xf32> to vector<1x128xf32>
      %74 = arith.maximumf %72, %73 : vector<1x128xf32>
      %75 = vector.extract_strided_slice %13 {offsets = [3, 0], sizes = [1, 128], strides = [1, 1]} : vector<64x128xf32> to vector<1x128xf32>
      %76 = arith.maximumf %74, %75 : vector<1x128xf32>
      %77 = vector.extract_strided_slice %13 {offsets = [5, 0], sizes = [1, 128], strides = [1, 1]} : vector<64x128xf32> to vector<1x128xf32>
      %78 = arith.maximumf %76, %77 : vector<1x128xf32>
      %79 = vector.extract_strided_slice %13 {offsets = [6, 0], sizes = [1, 128], strides = [1, 1]} : vector<64x128xf32> to vector<1x128xf32>
      %80 = arith.maximumf %78, %79 : vector<1x128xf32>
      %81 = vector.extract_strided_slice %13 {offsets = [7, 0], sizes = [1, 128], strides = [1, 1]} : vector<64x128xf32> to vector<1x128xf32>
      %82 = arith.maximumf %80, %81 : vector<1x128xf32>
      %83 = vector.extract_strided_slice %13 {offsets = [9, 0], sizes = [1, 128], strides = [1, 1]} : vector<64x128xf32> to vector<1x128xf32>
      %84 = arith.maximumf %82, %83 : vector<1x128xf32>
      %85 = vector.extract_strided_slice %13 {offsets = [10, 0], sizes = [1, 128], strides = [1, 1]} : vector<64x128xf32> to vector<1x128xf32>
      %86 = arith.maximumf %84, %85 : vector<1x128xf32>
      %87 = vector.extract_strided_slice %13 {offsets = [11, 0], sizes = [1, 128], strides = [1, 1]} : vector<64x128xf32> to vector<1x128xf32>
      %88 = arith.maximumf %86, %87 : vector<1x128xf32>
      %89 = vector.extract_strided_slice %13 {offsets = [17, 0], sizes = [1, 128], strides = [1, 1]} : vector<64x128xf32> to vector<1x128xf32>
      %90 = arith.maximumf %88, %89 : vector<1x128xf32>
      %91 = vector.extract_strided_slice %13 {offsets = [18, 0], sizes = [1, 128], strides = [1, 1]} : vector<64x128xf32> to vector<1x128xf32>
      %92 = arith.maximumf %90, %91 : vector<1x128xf32>
      %93 = vector.extract_strided_slice %13 {offsets = [19, 0], sizes = [1, 128], strides = [1, 1]} : vector<64x128xf32> to vector<1x128xf32>
      %94 = arith.maximumf %92, %93 : vector<1x128xf32>
      %95 = vector.extract_strided_slice %13 {offsets = [21, 0], sizes = [1, 128], strides = [1, 1]} : vector<64x128xf32> to vector<1x128xf32>
      %96 = arith.maximumf %94, %95 : vector<1x128xf32>
      %97 = vector.extract_strided_slice %13 {offsets = [22, 0], sizes = [1, 128], strides = [1, 1]} : vector<64x128xf32> to vector<1x128xf32>
      %98 = arith.maximumf %96, %97 : vector<1x128xf32>
      %99 = vector.extract_strided_slice %13 {offsets = [23, 0], sizes = [1, 128], strides = [1, 1]} : vector<64x128xf32> to vector<1x128xf32>
      %100 = arith.maximumf %98, %99 : vector<1x128xf32>
      %101 = vector.extract_strided_slice %13 {offsets = [25, 0], sizes = [1, 128], strides = [1, 1]} : vector<64x128xf32> to vector<1x128xf32>
      %102 = arith.maximumf %100, %101 : vector<1x128xf32>
      %103 = vector.extract_strided_slice %13 {offsets = [26, 0], sizes = [1, 128], strides = [1, 1]} : vector<64x128xf32> to vector<1x128xf32>
      %104 = arith.maximumf %102, %103 : vector<1x128xf32>
      %105 = vector.extract_strided_slice %13 {offsets = [27, 0], sizes = [1, 128], strides = [1, 1]} : vector<64x128xf32> to vector<1x128xf32>
      %106 = arith.maximumf %104, %105 : vector<1x128xf32>
      %107 = vector.extract_strided_slice %13 {offsets = [33, 0], sizes = [1, 128], strides = [1, 1]} : vector<64x128xf32> to vector<1x128xf32>
      %108 = arith.maximumf %106, %107 : vector<1x128xf32>
      %109 = vector.extract_strided_slice %13 {offsets = [34, 0], sizes = [1, 128], strides = [1, 1]} : vector<64x128xf32> to vector<1x128xf32>
      %110 = arith.maximumf %108, %109 : vector<1x128xf32>
      %111 = vector.extract_strided_slice %13 {offsets = [35, 0], sizes = [1, 128], strides = [1, 1]} : vector<64x128xf32> to vector<1x128xf32>
      %112 = arith.maximumf %110, %111 : vector<1x128xf32>
      %113 = vector.extract_strided_slice %13 {offsets = [37, 0], sizes = [1, 128], strides = [1, 1]} : vector<64x128xf32> to vector<1x128xf32>
      %114 = arith.maximumf %112, %113 : vector<1x128xf32>
      %115 = vector.extract_strided_slice %13 {offsets = [38, 0], sizes = [1, 128], strides = [1, 1]} : vector<64x128xf32> to vector<1x128xf32>
      %116 = arith.maximumf %114, %115 : vector<1x128xf32>
      %117 = vector.extract_strided_slice %13 {offsets = [39, 0], sizes = [1, 128], strides = [1, 1]} : vector<64x128xf32> to vector<1x128xf32>
      %118 = arith.maximumf %116, %117 : vector<1x128xf32>
      %119 = vector.extract_strided_slice %13 {offsets = [41, 0], sizes = [1, 128], strides = [1, 1]} : vector<64x128xf32> to vector<1x128xf32>
      %120 = arith.maximumf %118, %119 : vector<1x128xf32>
      %121 = vector.extract_strided_slice %13 {offsets = [42, 0], sizes = [1, 128], strides = [1, 1]} : vector<64x128xf32> to vector<1x128xf32>
      %122 = arith.maximumf %120, %121 : vector<1x128xf32>
      %123 = vector.extract_strided_slice %13 {offsets = [43, 0], sizes = [1, 128], strides = [1, 1]} : vector<64x128xf32> to vector<1x128xf32>
      %124 = arith.maximumf %122, %123 : vector<1x128xf32>
      %c1 = arith.constant 1 : index
      %c0_18 = arith.constant 0 : index
      %c0_19 = arith.constant 0 : index
      %125 = vector.load %arg4[%c1, %c0_18, %c0_19] : memref<8x128x128xf32, #tpu.memory_space<vmem>>, vector<1x128x128xf32>
      %126 = vector.shape_cast %125 : vector<1x128x128xf32> to vector<128x128xf32>
      %cst_20 = arith.constant dense<0.000000e+00> : vector<1x128xf32>
      %127 = tpu.matmul %124, %126, %cst_20 {dimension_numbers = #tpu.dot_dimension_numbers<[1], [0], [0], [1], [0, 0, 1, 1], [], []>} : vector<1x128xf32>, vector<128x128xf32>, vector<1x128xf32> -> vector<1x128xf32>
      %128 = arith.addf %71, %127 : vector<1x128xf32>
      %129 = vector.extract_strided_slice %13 {offsets = [4, 0], sizes = [1, 128], strides = [1, 1]} : vector<64x128xf32> to vector<1x128xf32>
      %130 = vector.extract_strided_slice %13 {offsets = [5, 0], sizes = [1, 128], strides = [1, 1]} : vector<64x128xf32> to vector<1x128xf32>
      %131 = arith.maximumf %129, %130 : vector<1x128xf32>
      %132 = vector.extract_strided_slice %13 {offsets = [6, 0], sizes = [1, 128], strides = [1, 1]} : vector<64x128xf32> to vector<1x128xf32>
      %133 = arith.maximumf %131, %132 : vector<1x128xf32>
      %134 = vector.extract_strided_slice %13 {offsets = [8, 0], sizes = [1, 128], strides = [1, 1]} : vector<64x128xf32> to vector<1x128xf32>
      %135 = arith.maximumf %133, %134 : vector<1x128xf32>
      %136 = vector.extract_strided_slice %13 {offsets = [9, 0], sizes = [1, 128], strides = [1, 1]} : vector<64x128xf32> to vector<1x128xf32>
      %137 = arith.maximumf %135, %136 : vector<1x128xf32>
      %138 = vector.extract_strided_slice %13 {offsets = [10, 0], sizes = [1, 128], strides = [1, 1]} : vector<64x128xf32> to vector<1x128xf32>
      %139 = arith.maximumf %137, %138 : vector<1x128xf32>
      %140 = vector.extract_strided_slice %13 {offsets = [12, 0], sizes = [1, 128], strides = [1, 1]} : vector<64x128xf32> to vector<1x128xf32>
      %141 = arith.maximumf %139, %140 : vector<1x128xf32>
      %142 = vector.extract_strided_slice %13 {offsets = [13, 0], sizes = [1, 128], strides = [1, 1]} : vector<64x128xf32> to vector<1x128xf32>
      %143 = arith.maximumf %141, %142 : vector<1x128xf32>
      %144 = vector.extract_strided_slice %13 {offsets = [14, 0], sizes = [1, 128], strides = [1, 1]} : vector<64x128xf32> to vector<1x128xf32>
      %145 = arith.maximumf %143, %144 : vector<1x128xf32>
      %146 = vector.extract_strided_slice %13 {offsets = [20, 0], sizes = [1, 128], strides = [1, 1]} : vector<64x128xf32> to vector<1x128xf32>
      %147 = arith.maximumf %145, %146 : vector<1x128xf32>
      %148 = vector.extract_strided_slice %13 {offsets = [21, 0], sizes = [1, 128], strides = [1, 1]} : vector<64x128xf32> to vector<1x128xf32>
      %149 = arith.maximumf %147, %148 : vector<1x128xf32>
      %150 = vector.extract_strided_slice %13 {offsets = [22, 0], sizes = [1, 128], strides = [1, 1]} : vector<64x128xf32> to vector<1x128xf32>
      %151 = arith.maximumf %149, %150 : vector<1x128xf32>
      %152 = vector.extract_strided_slice %13 {offsets = [24, 0], sizes = [1, 128], strides = [1, 1]} : vector<64x128xf32> to vector<1x128xf32>
      %153 = arith.maximumf %151, %152 : vector<1x128xf32>
      %154 = vector.extract_strided_slice %13 {offsets = [25, 0], sizes = [1, 128], strides = [1, 1]} : vector<64x128xf32> to vector<1x128xf32>
      %155 = arith.maximumf %153, %154 : vector<1x128xf32>
      %156 = vector.extract_strided_slice %13 {offsets = [26, 0], sizes = [1, 128], strides = [1, 1]} : vector<64x128xf32> to vector<1x128xf32>
      %157 = arith.maximumf %155, %156 : vector<1x128xf32>
      %158 = vector.extract_strided_slice %13 {offsets = [28, 0], sizes = [1, 128], strides = [1, 1]} : vector<64x128xf32> to vector<1x128xf32>
      %159 = arith.maximumf %157, %158 : vector<1x128xf32>
      %160 = vector.extract_strided_slice %13 {offsets = [29, 0], sizes = [1, 128], strides = [1, 1]} : vector<64x128xf32> to vector<1x128xf32>
      %161 = arith.maximumf %159, %160 : vector<1x128xf32>
      %162 = vector.extract_strided_slice %13 {offsets = [30, 0], sizes = [1, 128], strides = [1, 1]} : vector<64x128xf32> to vector<1x128xf32>
      %163 = arith.maximumf %161, %162 : vector<1x128xf32>
      %164 = vector.extract_strided_slice %13 {offsets = [36, 0], sizes = [1, 128], strides = [1, 1]} : vector<64x128xf32> to vector<1x128xf32>
      %165 = arith.maximumf %163, %164 : vector<1x128xf32>
      %166 = vector.extract_strided_slice %13 {offsets = [37, 0], sizes = [1, 128], strides = [1, 1]} : vector<64x128xf32> to vector<1x128xf32>
      %167 = arith.maximumf %165, %166 : vector<1x128xf32>
      %168 = vector.extract_strided_slice %13 {offsets = [38, 0], sizes = [1, 128], strides = [1, 1]} : vector<64x128xf32> to vector<1x128xf32>
      %169 = arith.maximumf %167, %168 : vector<1x128xf32>
      %170 = vector.extract_strided_slice %13 {offsets = [40, 0], sizes = [1, 128], strides = [1, 1]} : vector<64x128xf32> to vector<1x128xf32>
      %171 = arith.maximumf %169, %170 : vector<1x128xf32>
      %172 = vector.extract_strided_slice %13 {offsets = [41, 0], sizes = [1, 128], strides = [1, 1]} : vector<64x128xf32> to vector<1x128xf32>
      %173 = arith.maximumf %171, %172 : vector<1x128xf32>
      %174 = vector.extract_strided_slice %13 {offsets = [42, 0], sizes = [1, 128], strides = [1, 1]} : vector<64x128xf32> to vector<1x128xf32>
      %175 = arith.maximumf %173, %174 : vector<1x128xf32>
      %176 = vector.extract_strided_slice %13 {offsets = [44, 0], sizes = [1, 128], strides = [1, 1]} : vector<64x128xf32> to vector<1x128xf32>
      %177 = arith.maximumf %175, %176 : vector<1x128xf32>
      %178 = vector.extract_strided_slice %13 {offsets = [45, 0], sizes = [1, 128], strides = [1, 1]} : vector<64x128xf32> to vector<1x128xf32>
      %179 = arith.maximumf %177, %178 : vector<1x128xf32>
      %180 = vector.extract_strided_slice %13 {offsets = [46, 0], sizes = [1, 128], strides = [1, 1]} : vector<64x128xf32> to vector<1x128xf32>
      %181 = arith.maximumf %179, %180 : vector<1x128xf32>
      %c2 = arith.constant 2 : index
      %c0_21 = arith.constant 0 : index
      %c0_22 = arith.constant 0 : index
      %182 = vector.load %arg4[%c2, %c0_21, %c0_22] : memref<8x128x128xf32, #tpu.memory_space<vmem>>, vector<1x128x128xf32>
      %183 = vector.shape_cast %182 : vector<1x128x128xf32> to vector<128x128xf32>
      %cst_23 = arith.constant dense<0.000000e+00> : vector<1x128xf32>
      %184 = tpu.matmul %181, %183, %cst_23 {dimension_numbers = #tpu.dot_dimension_numbers<[1], [0], [0], [1], [0, 0, 1, 1], [], []>} : vector<1x128xf32>, vector<128x128xf32>, vector<1x128xf32> -> vector<1x128xf32>
      %185 = arith.addf %128, %184 : vector<1x128xf32>
      %186 = vector.extract_strided_slice %13 {offsets = [5, 0], sizes = [1, 128], strides = [1, 1]} : vector<64x128xf32> to vector<1x128xf32>
      %187 = vector.extract_strided_slice %13 {offsets = [6, 0], sizes = [1, 128], strides = [1, 1]} : vector<64x128xf32> to vector<1x128xf32>
      %188 = arith.maximumf %186, %187 : vector<1x128xf32>
      %189 = vector.extract_strided_slice %13 {offsets = [7, 0], sizes = [1, 128], strides = [1, 1]} : vector<64x128xf32> to vector<1x128xf32>
      %190 = arith.maximumf %188, %189 : vector<1x128xf32>
      %191 = vector.extract_strided_slice %13 {offsets = [9, 0], sizes = [1, 128], strides = [1, 1]} : vector<64x128xf32> to vector<1x128xf32>
      %192 = arith.maximumf %190, %191 : vector<1x128xf32>
      %193 = vector.extract_strided_slice %13 {offsets = [10, 0], sizes = [1, 128], strides = [1, 1]} : vector<64x128xf32> to vector<1x128xf32>
      %194 = arith.maximumf %192, %193 : vector<1x128xf32>
      %195 = vector.extract_strided_slice %13 {offsets = [11, 0], sizes = [1, 128], strides = [1, 1]} : vector<64x128xf32> to vector<1x128xf32>
      %196 = arith.maximumf %194, %195 : vector<1x128xf32>
      %197 = vector.extract_strided_slice %13 {offsets = [13, 0], sizes = [1, 128], strides = [1, 1]} : vector<64x128xf32> to vector<1x128xf32>
      %198 = arith.maximumf %196, %197 : vector<1x128xf32>
      %199 = vector.extract_strided_slice %13 {offsets = [14, 0], sizes = [1, 128], strides = [1, 1]} : vector<64x128xf32> to vector<1x128xf32>
      %200 = arith.maximumf %198, %199 : vector<1x128xf32>
      %201 = vector.extract_strided_slice %13 {offsets = [15, 0], sizes = [1, 128], strides = [1, 1]} : vector<64x128xf32> to vector<1x128xf32>
      %202 = arith.maximumf %200, %201 : vector<1x128xf32>
      %203 = vector.extract_strided_slice %13 {offsets = [21, 0], sizes = [1, 128], strides = [1, 1]} : vector<64x128xf32> to vector<1x128xf32>
      %204 = arith.maximumf %202, %203 : vector<1x128xf32>
      %205 = vector.extract_strided_slice %13 {offsets = [22, 0], sizes = [1, 128], strides = [1, 1]} : vector<64x128xf32> to vector<1x128xf32>
      %206 = arith.maximumf %204, %205 : vector<1x128xf32>
      %207 = vector.extract_strided_slice %13 {offsets = [23, 0], sizes = [1, 128], strides = [1, 1]} : vector<64x128xf32> to vector<1x128xf32>
      %208 = arith.maximumf %206, %207 : vector<1x128xf32>
      %209 = vector.extract_strided_slice %13 {offsets = [25, 0], sizes = [1, 128], strides = [1, 1]} : vector<64x128xf32> to vector<1x128xf32>
      %210 = arith.maximumf %208, %209 : vector<1x128xf32>
      %211 = vector.extract_strided_slice %13 {offsets = [26, 0], sizes = [1, 128], strides = [1, 1]} : vector<64x128xf32> to vector<1x128xf32>
      %212 = arith.maximumf %210, %211 : vector<1x128xf32>
      %213 = vector.extract_strided_slice %13 {offsets = [27, 0], sizes = [1, 128], strides = [1, 1]} : vector<64x128xf32> to vector<1x128xf32>
      %214 = arith.maximumf %212, %213 : vector<1x128xf32>
      %215 = vector.extract_strided_slice %13 {offsets = [29, 0], sizes = [1, 128], strides = [1, 1]} : vector<64x128xf32> to vector<1x128xf32>
      %216 = arith.maximumf %214, %215 : vector<1x128xf32>
      %217 = vector.extract_strided_slice %13 {offsets = [30, 0], sizes = [1, 128], strides = [1, 1]} : vector<64x128xf32> to vector<1x128xf32>
      %218 = arith.maximumf %216, %217 : vector<1x128xf32>
      %219 = vector.extract_strided_slice %13 {offsets = [31, 0], sizes = [1, 128], strides = [1, 1]} : vector<64x128xf32> to vector<1x128xf32>
      %220 = arith.maximumf %218, %219 : vector<1x128xf32>
      %221 = vector.extract_strided_slice %13 {offsets = [37, 0], sizes = [1, 128], strides = [1, 1]} : vector<64x128xf32> to vector<1x128xf32>
      %222 = arith.maximumf %220, %221 : vector<1x128xf32>
      %223 = vector.extract_strided_slice %13 {offsets = [38, 0], sizes = [1, 128], strides = [1, 1]} : vector<64x128xf32> to vector<1x128xf32>
      %224 = arith.maximumf %222, %223 : vector<1x128xf32>
      %225 = vector.extract_strided_slice %13 {offsets = [39, 0], sizes = [1, 128], strides = [1, 1]} : vector<64x128xf32> to vector<1x128xf32>
      %226 = arith.maximumf %224, %225 : vector<1x128xf32>
      %227 = vector.extract_strided_slice %13 {offsets = [41, 0], sizes = [1, 128], strides = [1, 1]} : vector<64x128xf32> to vector<1x128xf32>
      %228 = arith.maximumf %226, %227 : vector<1x128xf32>
      %229 = vector.extract_strided_slice %13 {offsets = [42, 0], sizes = [1, 128], strides = [1, 1]} : vector<64x128xf32> to vector<1x128xf32>
      %230 = arith.maximumf %228, %229 : vector<1x128xf32>
      %231 = vector.extract_strided_slice %13 {offsets = [43, 0], sizes = [1, 128], strides = [1, 1]} : vector<64x128xf32> to vector<1x128xf32>
      %232 = arith.maximumf %230, %231 : vector<1x128xf32>
      %233 = vector.extract_strided_slice %13 {offsets = [45, 0], sizes = [1, 128], strides = [1, 1]} : vector<64x128xf32> to vector<1x128xf32>
      %234 = arith.maximumf %232, %233 : vector<1x128xf32>
      %235 = vector.extract_strided_slice %13 {offsets = [46, 0], sizes = [1, 128], strides = [1, 1]} : vector<64x128xf32> to vector<1x128xf32>
      %236 = arith.maximumf %234, %235 : vector<1x128xf32>
      %237 = vector.extract_strided_slice %13 {offsets = [47, 0], sizes = [1, 128], strides = [1, 1]} : vector<64x128xf32> to vector<1x128xf32>
      %238 = arith.maximumf %236, %237 : vector<1x128xf32>
      %c3 = arith.constant 3 : index
      %c0_24 = arith.constant 0 : index
      %c0_25 = arith.constant 0 : index
      %239 = vector.load %arg4[%c3, %c0_24, %c0_25] : memref<8x128x128xf32, #tpu.memory_space<vmem>>, vector<1x128x128xf32>
      %240 = vector.shape_cast %239 : vector<1x128x128xf32> to vector<128x128xf32>
      %cst_26 = arith.constant dense<0.000000e+00> : vector<1x128xf32>
      %241 = tpu.matmul %238, %240, %cst_26 {dimension_numbers = #tpu.dot_dimension_numbers<[1], [0], [0], [1], [0, 0, 1, 1], [], []>} : vector<1x128xf32>, vector<128x128xf32>, vector<1x128xf32> -> vector<1x128xf32>
      %242 = arith.addf %185, %241 : vector<1x128xf32>
      %243 = vector.extract_strided_slice %13 {offsets = [16, 0], sizes = [1, 128], strides = [1, 1]} : vector<64x128xf32> to vector<1x128xf32>
      %244 = vector.extract_strided_slice %13 {offsets = [17, 0], sizes = [1, 128], strides = [1, 1]} : vector<64x128xf32> to vector<1x128xf32>
      %245 = arith.maximumf %243, %244 : vector<1x128xf32>
      %246 = vector.extract_strided_slice %13 {offsets = [18, 0], sizes = [1, 128], strides = [1, 1]} : vector<64x128xf32> to vector<1x128xf32>
      %247 = arith.maximumf %245, %246 : vector<1x128xf32>
      %248 = vector.extract_strided_slice %13 {offsets = [20, 0], sizes = [1, 128], strides = [1, 1]} : vector<64x128xf32> to vector<1x128xf32>
      %249 = arith.maximumf %247, %248 : vector<1x128xf32>
      %250 = vector.extract_strided_slice %13 {offsets = [21, 0], sizes = [1, 128], strides = [1, 1]} : vector<64x128xf32> to vector<1x128xf32>
      %251 = arith.maximumf %249, %250 : vector<1x128xf32>
      %252 = vector.extract_strided_slice %13 {offsets = [22, 0], sizes = [1, 128], strides = [1, 1]} : vector<64x128xf32> to vector<1x128xf32>
      %253 = arith.maximumf %251, %252 : vector<1x128xf32>
      %254 = vector.extract_strided_slice %13 {offsets = [24, 0], sizes = [1, 128], strides = [1, 1]} : vector<64x128xf32> to vector<1x128xf32>
      %255 = arith.maximumf %253, %254 : vector<1x128xf32>
      %256 = vector.extract_strided_slice %13 {offsets = [25, 0], sizes = [1, 128], strides = [1, 1]} : vector<64x128xf32> to vector<1x128xf32>
      %257 = arith.maximumf %255, %256 : vector<1x128xf32>
      %258 = vector.extract_strided_slice %13 {offsets = [26, 0], sizes = [1, 128], strides = [1, 1]} : vector<64x128xf32> to vector<1x128xf32>
      %259 = arith.maximumf %257, %258 : vector<1x128xf32>
      %260 = vector.extract_strided_slice %13 {offsets = [32, 0], sizes = [1, 128], strides = [1, 1]} : vector<64x128xf32> to vector<1x128xf32>
      %261 = arith.maximumf %259, %260 : vector<1x128xf32>
      %262 = vector.extract_strided_slice %13 {offsets = [33, 0], sizes = [1, 128], strides = [1, 1]} : vector<64x128xf32> to vector<1x128xf32>
      %263 = arith.maximumf %261, %262 : vector<1x128xf32>
      %264 = vector.extract_strided_slice %13 {offsets = [34, 0], sizes = [1, 128], strides = [1, 1]} : vector<64x128xf32> to vector<1x128xf32>
      %265 = arith.maximumf %263, %264 : vector<1x128xf32>
      %266 = vector.extract_strided_slice %13 {offsets = [36, 0], sizes = [1, 128], strides = [1, 1]} : vector<64x128xf32> to vector<1x128xf32>
      %267 = arith.maximumf %265, %266 : vector<1x128xf32>
      %268 = vector.extract_strided_slice %13 {offsets = [37, 0], sizes = [1, 128], strides = [1, 1]} : vector<64x128xf32> to vector<1x128xf32>
      %269 = arith.maximumf %267, %268 : vector<1x128xf32>
      %270 = vector.extract_strided_slice %13 {offsets = [38, 0], sizes = [1, 128], strides = [1, 1]} : vector<64x128xf32> to vector<1x128xf32>
      %271 = arith.maximumf %269, %270 : vector<1x128xf32>
      %272 = vector.extract_strided_slice %13 {offsets = [40, 0], sizes = [1, 128], strides = [1, 1]} : vector<64x128xf32> to vector<1x128xf32>
      %273 = arith.maximumf %271, %272 : vector<1x128xf32>
      %274 = vector.extract_strided_slice %13 {offsets = [41, 0], sizes = [1, 128], strides = [1, 1]} : vector<64x128xf32> to vector<1x128xf32>
      %275 = arith.maximumf %273, %274 : vector<1x128xf32>
      %276 = vector.extract_strided_slice %13 {offsets = [42, 0], sizes = [1, 128], strides = [1, 1]} : vector<64x128xf32> to vector<1x128xf32>
      %277 = arith.maximumf %275, %276 : vector<1x128xf32>
      %278 = vector.extract_strided_slice %13 {offsets = [48, 0], sizes = [1, 128], strides = [1, 1]} : vector<64x128xf32> to vector<1x128xf32>
      %279 = arith.maximumf %277, %278 : vector<1x128xf32>
      %280 = vector.extract_strided_slice %13 {offsets = [49, 0], sizes = [1, 128], strides = [1, 1]} : vector<64x128xf32> to vector<1x128xf32>
      %281 = arith.maximumf %279, %280 : vector<1x128xf32>
      %282 = vector.extract_strided_slice %13 {offsets = [50, 0], sizes = [1, 128], strides = [1, 1]} : vector<64x128xf32> to vector<1x128xf32>
      %283 = arith.maximumf %281, %282 : vector<1x128xf32>
      %284 = vector.extract_strided_slice %13 {offsets = [52, 0], sizes = [1, 128], strides = [1, 1]} : vector<64x128xf32> to vector<1x128xf32>
      %285 = arith.maximumf %283, %284 : vector<1x128xf32>
      %286 = vector.extract_strided_slice %13 {offsets = [53, 0], sizes = [1, 128], strides = [1, 1]} : vector<64x128xf32> to vector<1x128xf32>
      %287 = arith.maximumf %285, %286 : vector<1x128xf32>
      %288 = vector.extract_strided_slice %13 {offsets = [54, 0], sizes = [1, 128], strides = [1, 1]} : vector<64x128xf32> to vector<1x128xf32>
      %289 = arith.maximumf %287, %288 : vector<1x128xf32>
      %290 = vector.extract_strided_slice %13 {offsets = [56, 0], sizes = [1, 128], strides = [1, 1]} : vector<64x128xf32> to vector<1x128xf32>
      %291 = arith.maximumf %289, %290 : vector<1x128xf32>
      %292 = vector.extract_strided_slice %13 {offsets = [57, 0], sizes = [1, 128], strides = [1, 1]} : vector<64x128xf32> to vector<1x128xf32>
      %293 = arith.maximumf %291, %292 : vector<1x128xf32>
      %294 = vector.extract_strided_slice %13 {offsets = [58, 0], sizes = [1, 128], strides = [1, 1]} : vector<64x128xf32> to vector<1x128xf32>
      %295 = arith.maximumf %293, %294 : vector<1x128xf32>
      %c4 = arith.constant 4 : index
      %c0_27 = arith.constant 0 : index
      %c0_28 = arith.constant 0 : index
      %296 = vector.load %arg4[%c4, %c0_27, %c0_28] : memref<8x128x128xf32, #tpu.memory_space<vmem>>, vector<1x128x128xf32>
      %297 = vector.shape_cast %296 : vector<1x128x128xf32> to vector<128x128xf32>
      %cst_29 = arith.constant dense<0.000000e+00> : vector<1x128xf32>
      %298 = tpu.matmul %295, %297, %cst_29 {dimension_numbers = #tpu.dot_dimension_numbers<[1], [0], [0], [1], [0, 0, 1, 1], [], []>} : vector<1x128xf32>, vector<128x128xf32>, vector<1x128xf32> -> vector<1x128xf32>
      %299 = arith.addf %242, %298 : vector<1x128xf32>
      %300 = vector.extract_strided_slice %13 {offsets = [17, 0], sizes = [1, 128], strides = [1, 1]} : vector<64x128xf32> to vector<1x128xf32>
      %301 = vector.extract_strided_slice %13 {offsets = [18, 0], sizes = [1, 128], strides = [1, 1]} : vector<64x128xf32> to vector<1x128xf32>
      %302 = arith.maximumf %300, %301 : vector<1x128xf32>
      %303 = vector.extract_strided_slice %13 {offsets = [19, 0], sizes = [1, 128], strides = [1, 1]} : vector<64x128xf32> to vector<1x128xf32>
      %304 = arith.maximumf %302, %303 : vector<1x128xf32>
      %305 = vector.extract_strided_slice %13 {offsets = [21, 0], sizes = [1, 128], strides = [1, 1]} : vector<64x128xf32> to vector<1x128xf32>
      %306 = arith.maximumf %304, %305 : vector<1x128xf32>
      %307 = vector.extract_strided_slice %13 {offsets = [22, 0], sizes = [1, 128], strides = [1, 1]} : vector<64x128xf32> to vector<1x128xf32>
      %308 = arith.maximumf %306, %307 : vector<1x128xf32>
      %309 = vector.extract_strided_slice %13 {offsets = [23, 0], sizes = [1, 128], strides = [1, 1]} : vector<64x128xf32> to vector<1x128xf32>
      %310 = arith.maximumf %308, %309 : vector<1x128xf32>
      %311 = vector.extract_strided_slice %13 {offsets = [25, 0], sizes = [1, 128], strides = [1, 1]} : vector<64x128xf32> to vector<1x128xf32>
      %312 = arith.maximumf %310, %311 : vector<1x128xf32>
      %313 = vector.extract_strided_slice %13 {offsets = [26, 0], sizes = [1, 128], strides = [1, 1]} : vector<64x128xf32> to vector<1x128xf32>
      %314 = arith.maximumf %312, %313 : vector<1x128xf32>
      %315 = vector.extract_strided_slice %13 {offsets = [27, 0], sizes = [1, 128], strides = [1, 1]} : vector<64x128xf32> to vector<1x128xf32>
      %316 = arith.maximumf %314, %315 : vector<1x128xf32>
      %317 = vector.extract_strided_slice %13 {offsets = [33, 0], sizes = [1, 128], strides = [1, 1]} : vector<64x128xf32> to vector<1x128xf32>
      %318 = arith.maximumf %316, %317 : vector<1x128xf32>
      %319 = vector.extract_strided_slice %13 {offsets = [34, 0], sizes = [1, 128], strides = [1, 1]} : vector<64x128xf32> to vector<1x128xf32>
      %320 = arith.maximumf %318, %319 : vector<1x128xf32>
      %321 = vector.extract_strided_slice %13 {offsets = [35, 0], sizes = [1, 128], strides = [1, 1]} : vector<64x128xf32> to vector<1x128xf32>
      %322 = arith.maximumf %320, %321 : vector<1x128xf32>
      %323 = vector.extract_strided_slice %13 {offsets = [37, 0], sizes = [1, 128], strides = [1, 1]} : vector<64x128xf32> to vector<1x128xf32>
      %324 = arith.maximumf %322, %323 : vector<1x128xf32>
      %325 = vector.extract_strided_slice %13 {offsets = [38, 0], sizes = [1, 128], strides = [1, 1]} : vector<64x128xf32> to vector<1x128xf32>
      %326 = arith.maximumf %324, %325 : vector<1x128xf32>
      %327 = vector.extract_strided_slice %13 {offsets = [39, 0], sizes = [1, 128], strides = [1, 1]} : vector<64x128xf32> to vector<1x128xf32>
      %328 = arith.maximumf %326, %327 : vector<1x128xf32>
      %329 = vector.extract_strided_slice %13 {offsets = [41, 0], sizes = [1, 128], strides = [1, 1]} : vector<64x128xf32> to vector<1x128xf32>
      %330 = arith.maximumf %328, %329 : vector<1x128xf32>
      %331 = vector.extract_strided_slice %13 {offsets = [42, 0], sizes = [1, 128], strides = [1, 1]} : vector<64x128xf32> to vector<1x128xf32>
      %332 = arith.maximumf %330, %331 : vector<1x128xf32>
      %333 = vector.extract_strided_slice %13 {offsets = [43, 0], sizes = [1, 128], strides = [1, 1]} : vector<64x128xf32> to vector<1x128xf32>
      %334 = arith.maximumf %332, %333 : vector<1x128xf32>
      %335 = vector.extract_strided_slice %13 {offsets = [49, 0], sizes = [1, 128], strides = [1, 1]} : vector<64x128xf32> to vector<1x128xf32>
      %336 = arith.maximumf %334, %335 : vector<1x128xf32>
      %337 = vector.extract_strided_slice %13 {offsets = [50, 0], sizes = [1, 128], strides = [1, 1]} : vector<64x128xf32> to vector<1x128xf32>
      %338 = arith.maximumf %336, %337 : vector<1x128xf32>
      %339 = vector.extract_strided_slice %13 {offsets = [51, 0], sizes = [1, 128], strides = [1, 1]} : vector<64x128xf32> to vector<1x128xf32>
      %340 = arith.maximumf %338, %339 : vector<1x128xf32>
      %341 = vector.extract_strided_slice %13 {offsets = [53, 0], sizes = [1, 128], strides = [1, 1]} : vector<64x128xf32> to vector<1x128xf32>
      %342 = arith.maximumf %340, %341 : vector<1x128xf32>
      %343 = vector.extract_strided_slice %13 {offsets = [54, 0], sizes = [1, 128], strides = [1, 1]} : vector<64x128xf32> to vector<1x128xf32>
      %344 = arith.maximumf %342, %343 : vector<1x128xf32>
      %345 = vector.extract_strided_slice %13 {offsets = [55, 0], sizes = [1, 128], strides = [1, 1]} : vector<64x128xf32> to vector<1x128xf32>
      %346 = arith.maximumf %344, %345 : vector<1x128xf32>
      %347 = vector.extract_strided_slice %13 {offsets = [57, 0], sizes = [1, 128], strides = [1, 1]} : vector<64x128xf32> to vector<1x128xf32>
      %348 = arith.maximumf %346, %347 : vector<1x128xf32>
      %349 = vector.extract_strided_slice %13 {offsets = [58, 0], sizes = [1, 128], strides = [1, 1]} : vector<64x128xf32> to vector<1x128xf32>
      %350 = arith.maximumf %348, %349 : vector<1x128xf32>
      %351 = vector.extract_strided_slice %13 {offsets = [59, 0], sizes = [1, 128], strides = [1, 1]} : vector<64x128xf32> to vector<1x128xf32>
      %352 = arith.maximumf %350, %351 : vector<1x128xf32>
      %c5 = arith.constant 5 : index
      %c0_30 = arith.constant 0 : index
      %c0_31 = arith.constant 0 : index
      %353 = vector.load %arg4[%c5, %c0_30, %c0_31] : memref<8x128x128xf32, #tpu.memory_space<vmem>>, vector<1x128x128xf32>
      %354 = vector.shape_cast %353 : vector<1x128x128xf32> to vector<128x128xf32>
      %cst_32 = arith.constant dense<0.000000e+00> : vector<1x128xf32>
      %355 = tpu.matmul %352, %354, %cst_32 {dimension_numbers = #tpu.dot_dimension_numbers<[1], [0], [0], [1], [0, 0, 1, 1], [], []>} : vector<1x128xf32>, vector<128x128xf32>, vector<1x128xf32> -> vector<1x128xf32>
      %356 = arith.addf %299, %355 : vector<1x128xf32>
      %357 = vector.extract_strided_slice %13 {offsets = [20, 0], sizes = [1, 128], strides = [1, 1]} : vector<64x128xf32> to vector<1x128xf32>
      %358 = vector.extract_strided_slice %13 {offsets = [21, 0], sizes = [1, 128], strides = [1, 1]} : vector<64x128xf32> to vector<1x128xf32>
      %359 = arith.maximumf %357, %358 : vector<1x128xf32>
      %360 = vector.extract_strided_slice %13 {offsets = [22, 0], sizes = [1, 128], strides = [1, 1]} : vector<64x128xf32> to vector<1x128xf32>
      %361 = arith.maximumf %359, %360 : vector<1x128xf32>
      %362 = vector.extract_strided_slice %13 {offsets = [24, 0], sizes = [1, 128], strides = [1, 1]} : vector<64x128xf32> to vector<1x128xf32>
      %363 = arith.maximumf %361, %362 : vector<1x128xf32>
      %364 = vector.extract_strided_slice %13 {offsets = [25, 0], sizes = [1, 128], strides = [1, 1]} : vector<64x128xf32> to vector<1x128xf32>
      %365 = arith.maximumf %363, %364 : vector<1x128xf32>
      %366 = vector.extract_strided_slice %13 {offsets = [26, 0], sizes = [1, 128], strides = [1, 1]} : vector<64x128xf32> to vector<1x128xf32>
      %367 = arith.maximumf %365, %366 : vector<1x128xf32>
      %368 = vector.extract_strided_slice %13 {offsets = [28, 0], sizes = [1, 128], strides = [1, 1]} : vector<64x128xf32> to vector<1x128xf32>
      %369 = arith.maximumf %367, %368 : vector<1x128xf32>
      %370 = vector.extract_strided_slice %13 {offsets = [29, 0], sizes = [1, 128], strides = [1, 1]} : vector<64x128xf32> to vector<1x128xf32>
      %371 = arith.maximumf %369, %370 : vector<1x128xf32>
      %372 = vector.extract_strided_slice %13 {offsets = [30, 0], sizes = [1, 128], strides = [1, 1]} : vector<64x128xf32> to vector<1x128xf32>
      %373 = arith.maximumf %371, %372 : vector<1x128xf32>
      %374 = vector.extract_strided_slice %13 {offsets = [36, 0], sizes = [1, 128], strides = [1, 1]} : vector<64x128xf32> to vector<1x128xf32>
      %375 = arith.maximumf %373, %374 : vector<1x128xf32>
      %376 = vector.extract_strided_slice %13 {offsets = [37, 0], sizes = [1, 128], strides = [1, 1]} : vector<64x128xf32> to vector<1x128xf32>
      %377 = arith.maximumf %375, %376 : vector<1x128xf32>
      %378 = vector.extract_strided_slice %13 {offsets = [38, 0], sizes = [1, 128], strides = [1, 1]} : vector<64x128xf32> to vector<1x128xf32>
      %379 = arith.maximumf %377, %378 : vector<1x128xf32>
      %380 = vector.extract_strided_slice %13 {offsets = [40, 0], sizes = [1, 128], strides = [1, 1]} : vector<64x128xf32> to vector<1x128xf32>
      %381 = arith.maximumf %379, %380 : vector<1x128xf32>
      %382 = vector.extract_strided_slice %13 {offsets = [41, 0], sizes = [1, 128], strides = [1, 1]} : vector<64x128xf32> to vector<1x128xf32>
      %383 = arith.maximumf %381, %382 : vector<1x128xf32>
      %384 = vector.extract_strided_slice %13 {offsets = [42, 0], sizes = [1, 128], strides = [1, 1]} : vector<64x128xf32> to vector<1x128xf32>
      %385 = arith.maximumf %383, %384 : vector<1x128xf32>
      %386 = vector.extract_strided_slice %13 {offsets = [44, 0], sizes = [1, 128], strides = [1, 1]} : vector<64x128xf32> to vector<1x128xf32>
      %387 = arith.maximumf %385, %386 : vector<1x128xf32>
      %388 = vector.extract_strided_slice %13 {offsets = [45, 0], sizes = [1, 128], strides = [1, 1]} : vector<64x128xf32> to vector<1x128xf32>
      %389 = arith.maximumf %387, %388 : vector<1x128xf32>
      %390 = vector.extract_strided_slice %13 {offsets = [46, 0], sizes = [1, 128], strides = [1, 1]} : vector<64x128xf32> to vector<1x128xf32>
      %391 = arith.maximumf %389, %390 : vector<1x128xf32>
      %392 = vector.extract_strided_slice %13 {offsets = [52, 0], sizes = [1, 128], strides = [1, 1]} : vector<64x128xf32> to vector<1x128xf32>
      %393 = arith.maximumf %391, %392 : vector<1x128xf32>
      %394 = vector.extract_strided_slice %13 {offsets = [53, 0], sizes = [1, 128], strides = [1, 1]} : vector<64x128xf32> to vector<1x128xf32>
      %395 = arith.maximumf %393, %394 : vector<1x128xf32>
      %396 = vector.extract_strided_slice %13 {offsets = [54, 0], sizes = [1, 128], strides = [1, 1]} : vector<64x128xf32> to vector<1x128xf32>
      %397 = arith.maximumf %395, %396 : vector<1x128xf32>
      %398 = vector.extract_strided_slice %13 {offsets = [56, 0], sizes = [1, 128], strides = [1, 1]} : vector<64x128xf32> to vector<1x128xf32>
      %399 = arith.maximumf %397, %398 : vector<1x128xf32>
      %400 = vector.extract_strided_slice %13 {offsets = [57, 0], sizes = [1, 128], strides = [1, 1]} : vector<64x128xf32> to vector<1x128xf32>
      %401 = arith.maximumf %399, %400 : vector<1x128xf32>
      %402 = vector.extract_strided_slice %13 {offsets = [58, 0], sizes = [1, 128], strides = [1, 1]} : vector<64x128xf32> to vector<1x128xf32>
      %403 = arith.maximumf %401, %402 : vector<1x128xf32>
      %404 = vector.extract_strided_slice %13 {offsets = [60, 0], sizes = [1, 128], strides = [1, 1]} : vector<64x128xf32> to vector<1x128xf32>
      %405 = arith.maximumf %403, %404 : vector<1x128xf32>
      %406 = vector.extract_strided_slice %13 {offsets = [61, 0], sizes = [1, 128], strides = [1, 1]} : vector<64x128xf32> to vector<1x128xf32>
      %407 = arith.maximumf %405, %406 : vector<1x128xf32>
      %408 = vector.extract_strided_slice %13 {offsets = [62, 0], sizes = [1, 128], strides = [1, 1]} : vector<64x128xf32> to vector<1x128xf32>
      %409 = arith.maximumf %407, %408 : vector<1x128xf32>
      %c6 = arith.constant 6 : index
      %c0_33 = arith.constant 0 : index
      %c0_34 = arith.constant 0 : index
      %410 = vector.load %arg4[%c6, %c0_33, %c0_34] : memref<8x128x128xf32, #tpu.memory_space<vmem>>, vector<1x128x128xf32>
      %411 = vector.shape_cast %410 : vector<1x128x128xf32> to vector<128x128xf32>
      %cst_35 = arith.constant dense<0.000000e+00> : vector<1x128xf32>
      %412 = tpu.matmul %409, %411, %cst_35 {dimension_numbers = #tpu.dot_dimension_numbers<[1], [0], [0], [1], [0, 0, 1, 1], [], []>} : vector<1x128xf32>, vector<128x128xf32>, vector<1x128xf32> -> vector<1x128xf32>
      %413 = arith.addf %356, %412 : vector<1x128xf32>
      %414 = vector.extract_strided_slice %13 {offsets = [21, 0], sizes = [1, 128], strides = [1, 1]} : vector<64x128xf32> to vector<1x128xf32>
      %415 = vector.extract_strided_slice %13 {offsets = [22, 0], sizes = [1, 128], strides = [1, 1]} : vector<64x128xf32> to vector<1x128xf32>
      %416 = arith.maximumf %414, %415 : vector<1x128xf32>
      %417 = vector.extract_strided_slice %13 {offsets = [23, 0], sizes = [1, 128], strides = [1, 1]} : vector<64x128xf32> to vector<1x128xf32>
      %418 = arith.maximumf %416, %417 : vector<1x128xf32>
      %419 = vector.extract_strided_slice %13 {offsets = [25, 0], sizes = [1, 128], strides = [1, 1]} : vector<64x128xf32> to vector<1x128xf32>
      %420 = arith.maximumf %418, %419 : vector<1x128xf32>
      %421 = vector.extract_strided_slice %13 {offsets = [26, 0], sizes = [1, 128], strides = [1, 1]} : vector<64x128xf32> to vector<1x128xf32>
      %422 = arith.maximumf %420, %421 : vector<1x128xf32>
      %423 = vector.extract_strided_slice %13 {offsets = [27, 0], sizes = [1, 128], strides = [1, 1]} : vector<64x128xf32> to vector<1x128xf32>
      %424 = arith.maximumf %422, %423 : vector<1x128xf32>
      %425 = vector.extract_strided_slice %13 {offsets = [29, 0], sizes = [1, 128], strides = [1, 1]} : vector<64x128xf32> to vector<1x128xf32>
      %426 = arith.maximumf %424, %425 : vector<1x128xf32>
      %427 = vector.extract_strided_slice %13 {offsets = [30, 0], sizes = [1, 128], strides = [1, 1]} : vector<64x128xf32> to vector<1x128xf32>
      %428 = arith.maximumf %426, %427 : vector<1x128xf32>
      %429 = vector.extract_strided_slice %13 {offsets = [31, 0], sizes = [1, 128], strides = [1, 1]} : vector<64x128xf32> to vector<1x128xf32>
      %430 = arith.maximumf %428, %429 : vector<1x128xf32>
      %431 = vector.extract_strided_slice %13 {offsets = [37, 0], sizes = [1, 128], strides = [1, 1]} : vector<64x128xf32> to vector<1x128xf32>
      %432 = arith.maximumf %430, %431 : vector<1x128xf32>
      %433 = vector.extract_strided_slice %13 {offsets = [38, 0], sizes = [1, 128], strides = [1, 1]} : vector<64x128xf32> to vector<1x128xf32>
      %434 = arith.maximumf %432, %433 : vector<1x128xf32>
      %435 = vector.extract_strided_slice %13 {offsets = [39, 0], sizes = [1, 128], strides = [1, 1]} : vector<64x128xf32> to vector<1x128xf32>
      %436 = arith.maximumf %434, %435 : vector<1x128xf32>
      %437 = vector.extract_strided_slice %13 {offsets = [41, 0], sizes = [1, 128], strides = [1, 1]} : vector<64x128xf32> to vector<1x128xf32>
      %438 = arith.maximumf %436, %437 : vector<1x128xf32>
      %439 = vector.extract_strided_slice %13 {offsets = [42, 0], sizes = [1, 128], strides = [1, 1]} : vector<64x128xf32> to vector<1x128xf32>
      %440 = arith.maximumf %438, %439 : vector<1x128xf32>
      %441 = vector.extract_strided_slice %13 {offsets = [43, 0], sizes = [1, 128], strides = [1, 1]} : vector<64x128xf32> to vector<1x128xf32>
      %442 = arith.maximumf %440, %441 : vector<1x128xf32>
      %443 = vector.extract_strided_slice %13 {offsets = [45, 0], sizes = [1, 128], strides = [1, 1]} : vector<64x128xf32> to vector<1x128xf32>
      %444 = arith.maximumf %442, %443 : vector<1x128xf32>
      %445 = vector.extract_strided_slice %13 {offsets = [46, 0], sizes = [1, 128], strides = [1, 1]} : vector<64x128xf32> to vector<1x128xf32>
      %446 = arith.maximumf %444, %445 : vector<1x128xf32>
      %447 = vector.extract_strided_slice %13 {offsets = [47, 0], sizes = [1, 128], strides = [1, 1]} : vector<64x128xf32> to vector<1x128xf32>
      %448 = arith.maximumf %446, %447 : vector<1x128xf32>
      %449 = vector.extract_strided_slice %13 {offsets = [53, 0], sizes = [1, 128], strides = [1, 1]} : vector<64x128xf32> to vector<1x128xf32>
      %450 = arith.maximumf %448, %449 : vector<1x128xf32>
      %451 = vector.extract_strided_slice %13 {offsets = [54, 0], sizes = [1, 128], strides = [1, 1]} : vector<64x128xf32> to vector<1x128xf32>
      %452 = arith.maximumf %450, %451 : vector<1x128xf32>
      %453 = vector.extract_strided_slice %13 {offsets = [55, 0], sizes = [1, 128], strides = [1, 1]} : vector<64x128xf32> to vector<1x128xf32>
      %454 = arith.maximumf %452, %453 : vector<1x128xf32>
      %455 = vector.extract_strided_slice %13 {offsets = [57, 0], sizes = [1, 128], strides = [1, 1]} : vector<64x128xf32> to vector<1x128xf32>
      %456 = arith.maximumf %454, %455 : vector<1x128xf32>
      %457 = vector.extract_strided_slice %13 {offsets = [58, 0], sizes = [1, 128], strides = [1, 1]} : vector<64x128xf32> to vector<1x128xf32>
      %458 = arith.maximumf %456, %457 : vector<1x128xf32>
      %459 = vector.extract_strided_slice %13 {offsets = [59, 0], sizes = [1, 128], strides = [1, 1]} : vector<64x128xf32> to vector<1x128xf32>
      %460 = arith.maximumf %458, %459 : vector<1x128xf32>
      %461 = vector.extract_strided_slice %13 {offsets = [61, 0], sizes = [1, 128], strides = [1, 1]} : vector<64x128xf32> to vector<1x128xf32>
      %462 = arith.maximumf %460, %461 : vector<1x128xf32>
      %463 = vector.extract_strided_slice %13 {offsets = [62, 0], sizes = [1, 128], strides = [1, 1]} : vector<64x128xf32> to vector<1x128xf32>
      %464 = arith.maximumf %462, %463 : vector<1x128xf32>
      %465 = vector.extract_strided_slice %13 {offsets = [63, 0], sizes = [1, 128], strides = [1, 1]} : vector<64x128xf32> to vector<1x128xf32>
      %466 = arith.maximumf %464, %465 : vector<1x128xf32>
      %c7 = arith.constant 7 : index
      %c0_36 = arith.constant 0 : index
      %c0_37 = arith.constant 0 : index
      %467 = vector.load %arg4[%c7, %c0_36, %c0_37] : memref<8x128x128xf32, #tpu.memory_space<vmem>>, vector<1x128x128xf32>
      %468 = vector.shape_cast %467 : vector<1x128x128xf32> to vector<128x128xf32>
      %cst_38 = arith.constant dense<0.000000e+00> : vector<1x128xf32>
      %469 = tpu.matmul %466, %468, %cst_38 {dimension_numbers = #tpu.dot_dimension_numbers<[1], [0], [0], [1], [0, 0, 1, 1], [], []>} : vector<1x128xf32>, vector<128x128xf32>, vector<1x128xf32> -> vector<1x128xf32>
      %470 = arith.addf %413, %469 : vector<1x128xf32>
      %c0_39 = arith.constant 0 : index
      %c0_40 = arith.constant 0 : index
      %c0_41 = arith.constant 0 : index
      %471 = vector.load %arg6[%c0_39, %c0_40, %c0_41] : memref<1x1x128xf32, #tpu.memory_space<vmem>>, vector<1x1x128xf32>
      %472 = vector.shape_cast %471 : vector<1x1x128xf32> to vector<1x128xf32>
      %473 = vector.shape_cast %470 : vector<1x128xf32> to vector<1x1x128xf32>
      tpu.vector_store %arg6[%c0_39, %c0_40, %c0_41], %473 {strides = array<i32>} : memref<1x1x128xf32, #tpu.memory_space<vmem>>, vector<1x1x128xf32>,
    } else {
    }
    return
  }
  func.func @transform_0(%arg0: i32, %arg1: i32) -> (i32, i32, i32) {
    %c0_i32 = arith.constant 0 : i32
    %c0_i32_0 = arith.constant 0 : i32
    return %arg0, %c0_i32, %arg1 : i32, i32, i32
  }
  func.func @transform_1(%arg0: i32, %arg1: i32) -> (i32, i32) {
    %c0_i32 = arith.constant 0 : i32
    %c0_i32_0 = arith.constant 0 : i32
    return %arg1, %c0_i32 : i32, i32
  }
  func.func @transform_2(%arg0: i32, %arg1: i32) -> (i32, i32, i32) {
    %c0_i32 = arith.constant 0 : i32
    %c0_i32_0 = arith.constant 0 : i32
    %c0_i32_1 = arith.constant 0 : i32
    %c0_i32_2 = arith.constant 0 : i32
    return %c0_i32, %c0_i32_0, %c0_i32_1 : i32, i32, i32
  }
  func.func @transform_3(%arg0: i32, %arg1: i32) -> (i32, i32) {
    %c0_i32 = arith.constant 0 : i32
    %c0_i32_0 = arith.constant 0 : i32
    %c0_i32_1 = arith.constant 0 : i32
    return %c0_i32, %c0_i32_0 : i32, i32
  }
  func.func @transform_4(%arg0: i32, %arg1: i32) -> (i32, i32, i32) {
    %c0_i32 = arith.constant 0 : i32
    %c0_i32_0 = arith.constant 0 : i32
    %c0_i32_1 = arith.constant 0 : i32
    return %arg0, %c0_i32, %c0_i32_0 : i32, i32, i32
  }
}

</mosaic_0001>

<bundles_post_ra>
// kernel: mapper_forward.1
= control target key start
LH: loop header
LB: loop body
LE: loop exit
PB: predicated region body
PF: predicated region fallthrough
CT: control target
= control target key end

     0   :  { %s2813_s0 = inlined_call_operand.vmem [shape: bf16[2,64,1024], index: 0, kind: input, shape index: {}]   ;;  %s2814_s1 = inlined_call_operand.vmem [shape: bf16[1024,128], index: 1, kind: input, shape index: {}]   ;;  %s2815_s2 = inlined_call_operand.vmem [shape: f32[8,128,128], index: 2, kind: input, shape index: {}]   ;;  %s2816_s3 = inlined_call_operand.vmem [shape: f32[1,128], index: 3, kind: input, shape index: {}]   ;;  %s2817_s4 = inlined_call_operand.hbm [shape: f32[2,1,128], index: 4, kind: output, shape index: {}]  }
   0x1   :  { %2818 = sst [smem:[#allocation7_spill]] %s2813_s0 }
   0x2   :  { %9 = vsyncpa [#allocation5], 0 }
   0x3   :  { %11 = vsyncpa [#allocation5 + $0x1], 0  ;;  %s2003_s15 = smov 0   ;;  %s2005_s16 = smov 0  }
   0x4   :  { %s2007_s17 = smov 0   ;;  %s2009_s18 = smov 0  }
   0x5   :  { %s2011_s19 = smov 0   ;;  %s2013_s20 = smov 0  }
   0x6   :  { %s2015_s21 = smov 0   ;;  %s2017_s22 = smov 0  }
   0x7   :  { %s2019_s23 = smov 0   ;;  %s2021_s24 = smov 0  }
   0x8 LB: > { %s1409_s25 = sadd.s32 4294967295, %s1975_s24   ;;  %s1410_s26 = sadd.s32 4294967294, %s1975_s24   ;;  %s1975_s24 = sphi %s2021_s24, %s17_s24   ;;  %s1971_s23 = sphi %s2019_s23, %s2831_s23   ;;  %s1967_s22 = sphi %s2017_s22, %s2830_s22   ;;  %s1963_s21 = sphi %s2015_s21, %s2829_s21   ;;  %s1959_s20 = sphi %s2013_s20, %s2828_s20   ;;  %s1955_s19 = sphi %s2011_s19, %s2827_s19   ;;  %s1951_s18 = sphi %s2009_s18, %s2826_s18   ;;  %s1947_s17 = sphi %s2007_s17, %s2825_s17   ;;  %s1943_s16 = sphi %s2005_s16, %s2824_s16   ;;  %s1939_s15 = sphi %s2003_s15, %s2823_s15  }
   0x9   : > { %s26_s27 = sadd.s32 1, %s1967_s22  ;;  %s29_s28 = sadd.s32 1, %s1971_s23 }
   0xa   : > { %p27_p0 = scmp.ge.s32.totalorder %s26_s27, 2  ;;  %s38_s29 = sadd.s32 1, %s1955_s19 }
   0xb   : > { %p45_p1 = scmp.ne.s32.totalorder %s1955_s19, %s1951_s18  ;;  %p46_p2 = scmp.eq.s32.totalorder %s1975_s24, 0 }
   0xc   : > { %s2833_s27 = smov (%p27_p0, %s26_s27), 0  ;;  %s2835_s28 = smov (!%p27_p0, %s29_s28), %s1971_s23 }
   0xd   : > { %s34_s30 = ssub.s32 %s1967_s22, %s2833_s27  ;;  %p2066_p3 = por %p46_p2, %p45_p1 }
   0xe   : > { %p31_p4 = scmp.ge.s32.totalorder %s2835_s28, 2  ;;  %s132_s6 = sadd.s32 1, %s1947_s17 }
   0xf   : > { %p142_p5 = scmp.ne.s32.totalorder %s1947_s17, %s1943_s16  ;;  %p143_p6 = scmp.eq.s32.totalorder %s1409_s25, 3 }
  0x10   : > { %s2837_s28 = smov (%p31_p4, %s2835_s28), 0  ;;  %p148_p8 = scmp.ne.s32.totalorder %s1943_s16, %s1939_s15 }
  0x11   : > { %p2075_p7 = por %p143_p6, %p142_p5  ;;  %s33_s8 = ssub.s32 %s1971_s23, %s2837_s28 }
  0x12   : > { %p149_p9 = scmp.eq.s32.totalorder %s1410_s26, 3  ;;  %s35_s9 = sor.u32 %s34_s30, %s33_s8 }
  0x13   : > { %p130_p10 = scmp.eq.s32.totalorder %s33_s8, 0  ;;  %p36_p11 = scmp.eq.s32.totalorder %s35_s9, 0 }
  0x14   : > { %p2083_p12 = por %p149_p9, %p148_p8  ;;  %p1412_p13 = scmp.ge.s32.totalorder %s1975_s24, 4 }
  0x15   : > { %s2088_s11 = scalar_select %p130_p10, %s1947_s17, %s132_s6  }
  0x16   : > { %s2091_s12 = scalar_select %p36_p11, %s1955_s19, %s38_s29  }
  0x17   : > { %171 = sbr.rel (%p1412_p13) target bundleno = 54 (0x36), region = 24 }
  0x1c   : > { %174 = sbr.rel (!%p2066_p3) target bundleno = 54 (0x36), region = 28  ;;  %s176_s13 = sand.u32 (%p2066_p3), 1, %s1955_s19  }
  0x1d   : > { %s1414_s14 = sshll.u32 (%p2066_p3), %s1967_s22, 2  ;;  %s1413_s25 = sshll.u32 (%p2066_p3), %s176_s13, 7 }
  0x1e   : > { %s1415_s26 = sshll.u32 (%p2066_p3), %s1971_s23, 6  ;;  %s2822_s0 = sld [smem:[#allocation7_spill]] (%p2066_p3) }
  0x1f   : > { %s181_s30 = sadd.s32 (%p2066_p3), %s1415_s26, %s1414_s14  ;;  %s178_s5 = scalar_lea.vmem (%p2066_p3), [#allocation3], %s1413_s25 }
  0x20   : > { %s1416_s8 = sshll.u32 (%p2066_p3), %s181_s30, 2 }
  0x24   : > { %s2102_s29 = scalar_lea.vmem %s2822_s0, %s1416_s8 }
  0x25   : > { %v196_v0 = vld [vmem:[%s2102_s29] sm:$0xff]  ;;  %v198_v1 = vld [vmem:[%s2102_s29 + $0x8] sm:$0xff] }
  0x26   : > { %v200_v2 = vld [vmem:[%s2102_s29 + $0x20] sm:$0xff]  ;;  %197 = vst [vmem:[%s178_s5] sm:$0xff] %v196_v0  ;;  %v202_v3 = vld [vmem:[%s2102_s29 + $0x28] sm:$0xff] }
  0x27   : > { %199 = vst [vmem:[%s178_s5 + $0x8] sm:$0xff] %v198_v1  ;;  %v204_v4 = vld [vmem:[%s2102_s29 + $0x40] sm:$0xff]  ;;  %v206_v5 = vld [vmem:[%s2102_s29 + $0x48] sm:$0xff] }
  0x28   : > { %201 = vst [vmem:[%s178_s5 + $0x10] sm:$0xff] %v200_v2  ;;  %v208_v6 = vld [vmem:[%s2102_s29 + $0x60] sm:$0xff]  ;;  %v210_v7 = vld [vmem:[%s2102_s29 + $0x68] sm:$0xff] }
  0x29   : > { %203 = vst [vmem:[%s178_s5 + $0x18] sm:$0xff] %v202_v3  ;;  %v212_v8 = vld [vmem:[%s2102_s29 + $0x80] sm:$0xff]  ;;  %v214_v9 = vld [vmem:[%s2102_s29 + $0x88] sm:$0xff] }
  0x2a   : > { %205 = vst [vmem:[%s178_s5 + $0x20] sm:$0xff] %v204_v4  ;;  %v216_v10 = vld [vmem:[%s2102_s29 + $0xa0] sm:$0xff]  ;;  %v218_v11 = vld [vmem:[%s2102_s29 + $0xa8] sm:$0xff] }
  0x2b   : > { %207 = vst [vmem:[%s178_s5 + $0x28] sm:$0xff] %v206_v5  ;;  %v220_v12 = vld [vmem:[%s2102_s29 + $0xc0] sm:$0xff]  ;;  %v222_v13 = vld [vmem:[%s2102_s29 + $0xc8] sm:$0xff] }
  0x2c   : > { %209 = vst [vmem:[%s178_s5 + $0x30] sm:$0xff] %v208_v6  ;;  %v224_v14 = vld [vmem:[%s2102_s29 + $0xe0] sm:$0xff]  ;;  %v226_v15 = vld [vmem:[%s2102_s29 + $0xe8] sm:$0xff] }
  0x2d   : > { %211 = vst [vmem:[%s178_s5 + $0x38] sm:$0xff] %v210_v7 }
  0x2e   : > { %213 = vst [vmem:[%s178_s5 + $0x40] sm:$0xff] %v212_v8 }
  0x2f   : > { %215 = vst [vmem:[%s178_s5 + $0x48] sm:$0xff] %v214_v9 }
  0x30   : > { %217 = vst [vmem:[%s178_s5 + $0x50] sm:$0xff] %v216_v10 }
  0x31   : > { %219 = vst [vmem:[%s178_s5 + $0x58] sm:$0xff] %v218_v11 }
  0x32   : > { %221 = vst [vmem:[%s178_s5 + $0x60] sm:$0xff] %v220_v12 }
  0x33   : > { %223 = vst [vmem:[%s178_s5 + $0x68] sm:$0xff] %v222_v13 }
  0x34   : > { %225 = vst [vmem:[%s178_s5 + $0x70] sm:$0xff] %v224_v14 }
  0x35   : > { %227 = vst [vmem:[%s178_s5 + $0x78] sm:$0xff] %v226_v15 }
  0x36 PF: > { %p1417_p0 = scmp.ge.s32.totalorder %s1975_s24, 1  ;;  %p241_p1 = scmp.lt.s32.totalorder %s1975_s24, 5 }
  0x38   : > { %p242_p2 = pnand %p1417_p0, %p241_p1 }
  0x39   : > { %s248_s13 = sand.u32 (!%p242_p2), 1, %s1951_s18   ;;  %s275_s14 = sand.u32 (!%p242_p2), 1, %s1943_s16  }
  0x3a   : > { %245 = sbr.rel (%p242_p2) target bundleno = 552 (0x228), region = 55  ;;  %s1418_s25 = sshll.u32 (!%p242_p2), %s248_s13, 7 }
  0x3b   : > { %s1419_s26 = sshll.u32 (!%p242_p2), %s1959_s20, 6  ;;  %s2130_s29 = scalar_lea.vmem (!%p242_p2), [#allocation3], %s1418_s25 }
  0x3c   : > { %p279_p3 = scmp.lt.s32.totalorder (!%p242_p2), %s1419_s26, 127  ;;  %s2134_s5 = scalar_lea.vmem (!%p242_p2), [#allocation4], %s275_s14 }
  0x3d   : > { %p1421_p4 = scmp.ne.s32.totalorder (!%p242_p2), %s1959_s20, 0 }
  0x3f   : > { %s2839_s26 = smov (!%p279_p3, %s1419_s26), 127  ;;  %287 = sbr.rel (%p1421_p4) target bundleno = 77 (0x4d), region = 63 }
  0x40   : > { %s1420_s30 = sshll.u32 %s2839_s26, 2 }
  0x41   : > { %s2128_s6 = scalar_lea.vmem %s2814_s1, %s1420_s30 }
  0x44   : > { %v1977_v16 = vmov 0.0  }
  0x45   : > { %288 = vst [vmem:[#allocation2 + $0x30] sm:$0xff] %v1977_v16 }
  0x46   : > { %289 = vst [vmem:[#allocation2] sm:$0xff] %v1977_v16 }
  0x47   : > { %290 = vst [vmem:[#allocation2 + $0x18] sm:$0xff] %v1977_v16 }
  0x48   : > { %291 = vst [vmem:[#allocation2 + $0x10] sm:$0xff] %v1977_v16 }
  0x49   : > { %292 = vst [vmem:[#allocation2 + $0x8] sm:$0xff] %v1977_v16 }
  0x4a   : > { %293 = vst [vmem:[#allocation2 + $0x20] sm:$0xff] %v1977_v16 }
  0x4b   : > { %294 = vst [vmem:[#allocation2 + $0x28] sm:$0xff] %v1977_v16 }
  0x4c   : > { %295 = vst [vmem:[#allocation2 + $0x38] sm:$0xff] %v1977_v16 }
  0x4d PF: > { %v1752_v17 = vld [vmem:[%s2128_s6 + $0x38] sm:$0xff]  ;;  %v1751_v21 = vld [vmem:[%s2128_s6 + $0x30] sm:$0xff]  ;;  %v1750_v25 = vld [vmem:[%s2128_s6 + $0x28] sm:$0xff]  ;;  %p1614_p5 = scmp.ne.s32.totalorder %s1959_s20, 1 }
  0x4e   : > { %v1760_v18 = vld [vmem:[%s2128_s6 + $0x78] sm:$0xff]  ;;  %656 = vmatpush.bf16.msra.mxu0 %v1752_v17  ;;  %v1759_v22 = vld [vmem:[%s2128_s6 + $0x70] sm:$0xff]  ;;  %v1758_v26 = vld [vmem:[%s2128_s6 + $0x68] sm:$0xff] }
  0x4f   : > { %v1768_v19 = vld [vmem:[%s2128_s6 + $0xb8] sm:$0xff]  ;;  %685 = vmatpush.bf16.msra.mxu1 %v1760_v18  ;;  %v1767_v23 = vld [vmem:[%s2128_s6 + $0xb0] sm:$0xff]  ;;  %v1766_v27 = vld [vmem:[%s2128_s6 + $0xa8] sm:$0xff] }
  0x50   : > { %v1776_v20 = vld [vmem:[%s2128_s6 + $0xf8] sm:$0xff]  ;;  %714 = vmatpush.bf16.msra.mxu2 %v1768_v19  ;;  %v1775_v24 = vld [vmem:[%s2128_s6 + $0xf0] sm:$0xff]  ;;  %v1774_v28 = vld [vmem:[%s2128_s6 + $0xe8] sm:$0xff] }
  0x51   : > { %743 = vmatpush.bf16.msra.mxu3 %v1776_v20  ;;  %v1749_v29 = vld [vmem:[%s2128_s6 + $0x20] sm:$0xff]  ;;  %v1748_v33 = vld [vmem:[%s2128_s6 + $0x18] sm:$0xff]  ;;  %v1747_v37 = vld [vmem:[%s2128_s6 + $0x10] sm:$0xff] }
  0x52   : > { %657 = vmatpush.bf16.msra.mxu0 %v1751_v21  ;;  %v1757_v30 = vld [vmem:[%s2128_s6 + $0x60] sm:$0xff]  ;;  %v1756_v34 = vld [vmem:[%s2128_s6 + $0x58] sm:$0xff]  ;;  %v1755_v38 = vld [vmem:[%s2128_s6 + $0x50] sm:$0xff] }
  0x53   : > { %686 = vmatpush.bf16.msra.mxu1 %v1759_v22  ;;  %v1765_v31 = vld [vmem:[%s2128_s6 + $0xa0] sm:$0xff]  ;;  %v1764_v35 = vld [vmem:[%s2128_s6 + $0x98] sm:$0xff]  ;;  %v1763_v39 = vld [vmem:[%s2128_s6 + $0x90] sm:$0xff] }
  0x54   : > { %715 = vmatpush.bf16.msra.mxu2 %v1767_v23  ;;  %v1773_v32 = vld [vmem:[%s2128_s6 + $0xe0] sm:$0xff]  ;;  %v1772_v36 = vld [vmem:[%s2128_s6 + $0xd8] sm:$0xff]  ;;  %v1771_v40 = vld [vmem:[%s2128_s6 + $0xd0] sm:$0xff] }
  0x55   : > { %744 = vmatpush.bf16.msra.mxu3 %v1775_v24  ;;  %v1746_v41 = vld [vmem:[%s2128_s6 + $0x8] sm:$0xff]  ;;  %v1745_v45 = vld [vmem:[%s2128_s6] sm:$0xff]  ;;  %v1731_v50 = vld [vmem:[%s2130_s29 + $0xc] sm:$0xf0] }
  0x56   : > { %658 = vmatpush.bf16.msra.mxu0 %v1750_v25  ;;  %v1754_v42 = vld [vmem:[%s2128_s6 + $0x48] sm:$0xff]  ;;  %v1753_v46 = vld [vmem:[%s2128_s6 + $0x40] sm:$0xff]  ;;  %v1426_v52 = vld [vmem:[%s2130_s29 + $0x10] sm:$0xf0] }
  0x57   : > { %687 = vmatpush.bf16.msra.mxu1 %v1758_v26  ;;  %v1762_v43 = vld [vmem:[%s2128_s6 + $0x88] sm:$0xff]  ;;  %v1761_v47 = vld [vmem:[%s2128_s6 + $0x80] sm:$0xff]  ;;  %v1732_v54 = vld [vmem:[%s2130_s29 + $0x14] sm:$0xf0] }
  0x58   : > { %716 = vmatpush.bf16.msra.mxu2 %v1766_v27  ;;  %v1770_v44 = vld [vmem:[%s2128_s6 + $0xc8] sm:$0xff]  ;;  %v1769_v48 = vld [vmem:[%s2128_s6 + $0xc0] sm:$0xff]  ;;  %v1434_v56 = vld [vmem:[%s2130_s29 + $0x18] sm:$0xf0] }
  0x59   : > { %745 = vmatpush.bf16.msra.mxu3 %v1774_v28  ;;  %v1424_v49 = vld [vmem:[%s2130_s29] sm:$0xf]  ;;  %v1729_v51 = vld [vmem:[%s2130_s29 + $0x4] sm:$0xf]  ;;  %v1432_v53 = vld [vmem:[%s2130_s29 + $0x8] sm:$0xf] }
  0x5a   : > { %659 = vmatpush.bf16.msra.mxu0 %v1749_v29  ;;  %v1730_v55 = vld [vmem:[%s2130_s29 + $0xc] sm:$0xf]  ;;  %v1425_v57 = vor.u32 %v1731_v50, %v1424_v49  ;;  %v1429_v58 = vor.u32 %v1729_v51, %v1426_v52  ;;  %v1433_v59 = vor.u32 %v1732_v54, %v1432_v53  ;;  %v1440_v61 = vld [vmem:[%s2130_s29 + $0x20] sm:$0xf]  ;;  %v1735_v62 = vld [vmem:[%s2130_s29 + $0x2c] sm:$0xf0] }
  0x5b   : > { %688 = vmatpush.bf16.msra.mxu1 %v1757_v30  ;;  %v1437_v60 = vor.u32 %v1730_v55, %v1434_v56  ;;  %v1733_v63 = vld [vmem:[%s2130_s29 + $0x24] sm:$0xf]  ;;  %v1442_v0 = vld [vmem:[%s2130_s29 + $0x30] sm:$0xf0]  ;;  %v1448_v1 = vld [vmem:[%s2130_s29 + $0x28] sm:$0xf]  ;;  %v1441_v5 = vor.u32 %v1735_v62, %v1440_v61 }
  0x5c   : > { %717 = vmatpush.bf16.msra.mxu2 %v1765_v31  ;;  %v1736_v2 = vld [vmem:[%s2130_s29 + $0x34] sm:$0xf0]  ;;  %v1734_v3 = vld [vmem:[%s2130_s29 + $0x2c] sm:$0xf]  ;;  %v1450_v4 = vld [vmem:[%s2130_s29 + $0x38] sm:$0xf0]  ;;  %v1445_v6 = vor.u32 %v1733_v63, %v1442_v0 }
  0x5d   : > { %746 = vmatpush.bf16.msra.mxu3 %v1773_v32  ;;  %v1449_v7 = vor.u32 %v1736_v2, %v1448_v1  ;;  %v1453_v8 = vor.u32 %v1734_v3, %v1450_v4  ;;  %v1456_v9 = vld [vmem:[%s2130_s29 + $0x40] sm:$0xf]  ;;  %v1739_v10 = vld [vmem:[%s2130_s29 + $0x4c] sm:$0xf0]  ;;  %v1737_v11 = vld [vmem:[%s2130_s29 + $0x44] sm:$0xf] }
  0x5e   : > { %660 = vmatpush.bf16.msra.mxu0 %v1748_v33  ;;  %v1458_v12 = vld [vmem:[%s2130_s29 + $0x50] sm:$0xf0]  ;;  %v1464_v13 = vld [vmem:[%s2130_s29 + $0x48] sm:$0xf]  ;;  %v1740_v14 = vld [vmem:[%s2130_s29 + $0x54] sm:$0xf0]  ;;  %v1457_v17 = vor.u32 %v1739_v10, %v1456_v9 }
  0x5f   : > { %689 = vmatpush.bf16.msra.mxu1 %v1756_v34  ;;  %v1738_v15 = vld [vmem:[%s2130_s29 + $0x4c] sm:$0xf]  ;;  %v1466_v16 = vld [vmem:[%s2130_s29 + $0x58] sm:$0xf0]  ;;  %v1461_v18 = vor.u32 %v1737_v11, %v1458_v12  ;;  %v1465_v19 = vor.u32 %v1740_v14, %v1464_v13  ;;  %v1472_v21 = vld [vmem:[%s2130_s29 + $0x60] sm:$0xf] }
  0x60   : > { %718 = vmatpush.bf16.msra.mxu2 %v1764_v35  ;;  %v1469_v20 = vor.u32 %v1738_v15, %v1466_v16  ;;  %v1743_v22 = vld [vmem:[%s2130_s29 + $0x6c] sm:$0xf0]  ;;  %v1741_v23 = vld [vmem:[%s2130_s29 + $0x64] sm:$0xf]  ;;  %v1474_v24 = vld [vmem:[%s2130_s29 + $0x70] sm:$0xf0] }
  0x61   : > { %747 = vmatpush.bf16.msra.mxu3 %v1772_v36  ;;  %v1480_v25 = vld [vmem:[%s2130_s29 + $0x68] sm:$0xf]  ;;  %v1744_v26 = vld [vmem:[%s2130_s29 + $0x74] sm:$0xf0]  ;;  %v1742_v27 = vld [vmem:[%s2130_s29 + $0x6c] sm:$0xf]  ;;  %v1473_v29 = vor.u32 %v1743_v22, %v1472_v21  ;;  %v1477_v30 = vor.u32 %v1741_v23, %v1474_v24 }
  0x62   : > { %661 = vmatpush.bf16.msra.mxu0 %v1747_v37  ;;  %v1482_v28 = vld [vmem:[%s2130_s29 + $0x78] sm:$0xf0]  ;;  %v1481_v31 = vor.u32 %v1744_v26, %v1480_v25  ;;  %v297_v50 = vld [vmem:[#allocation2] sm:$0xff]  ;;  %v299_v4 = vld [vmem:[#allocation2 + $0x10] sm:$0xff] }
  0x63   : > { %690 = vmatpush.bf16.msra.mxu1 %v1755_v38  ;;  %v1485_v32 = vor.u32 %v1742_v27, %v1482_v28  ;;  %v300_v13 = vld [vmem:[#allocation2 + $0x8] sm:$0xff] }
  0x64   : > { %719 = vmatpush.bf16.msra.mxu2 %v1763_v39 }
  0x65   : > { %748 = vmatpush.bf16.msra.mxu3 %v1771_v40 }
  0x66   : > { %662 = vmatpush.bf16.msra.mxu0 %v1746_v41  ;;  %v296_v41 = vld [vmem:[#allocation2 + $0x30] sm:$0xff] }
  0x67   : > { %691 = vmatpush.bf16.msra.mxu1 %v1754_v42 }
  0x68   : > { %720 = vmatpush.bf16.msra.mxu2 %v1762_v43 }
  0x69   : > { %749 = vmatpush.bf16.msra.mxu3 %v1770_v44 }
  0x6a   : > { %663 = vmatpush.bf16.msra.mxu0 %v1745_v45 }
  0x6b   : > { %692 = vmatpush.bf16.msra.mxu1 %v1753_v46 }
  0x6c   : > { %721 = vmatpush.bf16.msra.mxu2 %v1761_v47 }
  0x6d   : > { %750 = vmatpush.bf16.msra.mxu3 %v1769_v48  ;;  %664 = vmatmul.bf16.vlgmr.msra.gmra.mxu0 %v1425_v57 }
  0x6e   : > { %693 = vmatmul.bf16.vlgmr.msra.gmra.mxu1 %v1429_v58 }
  0x6f   : > { %722 = vmatmul.bf16.vlgmr.msra.gmra.mxu2 %v1433_v59  ;;  %v298_v59 = vld [vmem:[#allocation2 + $0x18] sm:$0xff] }
  0x70   : > { %751 = vmatmul.bf16.vlgmr.msra.gmra.mxu3 %v1437_v60 }
  0x7d   : > { %669 = vmatmul.bf16.gmra.mxu0 %v1441_v5 }
  0x7e   : > { %698 = vmatmul.bf16.gmra.mxu1 %v1445_v6 }
  0x7f   : > { %727 = vmatmul.bf16.gmra.mxu2 %v1449_v7 }
  0x80   : > { %756 = vmatmul.bf16.gmra.mxu3 %v1453_v8 }
  0x8d   : > { %674 = vmatmul.bf16.gmra.mxu0 %v1457_v17 }
  0x8e   : > { %703 = vmatmul.bf16.gmra.mxu1 %v1461_v18 }
  0x8f   : > { %732 = vmatmul.bf16.gmra.mxu2 %v1465_v19 }
  0x90   : > { %761 = vmatmul.bf16.gmra.mxu3 %v1469_v20  ;;  %v301_v20 = vld [vmem:[#allocation2 + $0x20] sm:$0xff] }
  0x9d   : > { %679 = vmatmul.bf16.gmra.mxu0 %v1473_v29  ;;  %v302_v29 = vld [vmem:[#allocation2 + $0x28] sm:$0xff] }
  0x9e   : > { %708 = vmatmul.bf16.gmra.mxu1 %v1477_v30 }
  0x9f   : > { %737 = vmatmul.bf16.gmra.mxu2 %v1481_v31 }
  0xa0   : > { %766 = vmatmul.bf16.gmra.mxu3 %v1485_v32 }
  0xea   : > { %v665_v33 = vpop.f32.mrf.mxu0 }
  0xeb   : > { %v694_v34 = vpop.f32.mrf.mxu1 }
  0xec   : > { %v695_v35 = vadd.f32 %v694_v34, %v665_v33 }
  0xf2   : > { %v723_v36 = vpop.f32.mrf.mxu2  ;;  %v667_v39 = vpop.f32.mrf.mxu0 }
  0xf3   : > { %v752_v37 = vpop.f32.mrf.mxu3  ;;  %v724_v38 = vadd.f32 %v723_v36, %v695_v35  ;;  %v696_v40 = vpop.f32.mrf.mxu1 }
  0xf4   : > { %v697_v44 = vadd.f32 %v696_v40, %v667_v39 }
  0xf5   : > { %v753_v42 = vadd.f32 %v752_v37, %v724_v38  ;;  %v303_v37 = vld [vmem:[#allocation2 + $0x38] sm:$0xff] }
  0xf7   : > { %v772_v43 = vadd.f32 %v753_v42, %v296_v41 }
  0xf9   : > { %780 = vst [vmem:[#allocation2 + $0x30] sm:$0xff] %v772_v43 }
  0xfa   : > { %v725_v45 = vpop.f32.mrf.mxu2  ;;  %v670_v48 = vpop.f32.mrf.mxu0 }
  0xfb   : > { %v754_v46 = vpop.f32.mrf.mxu3  ;;  %v726_v47 = vadd.f32 %v725_v45, %v697_v44  ;;  %v699_v49 = vpop.f32.mrf.mxu1 }
  0xfc   : > { %v700_v53 = vadd.f32 %v699_v49, %v670_v48 }
  0xfd   : > { %v755_v51 = vadd.f32 %v754_v46, %v726_v47 }
  0xff   : > { %v773_v52 = vadd.f32 %v755_v51, %v297_v50 }
 0x101   : > { %781 = vst [vmem:[#allocation2] sm:$0xff] %v773_v52 }
 0x102   : > { %v728_v54 = vpop.f32.mrf.mxu2  ;;  %v672_v57 = vpop.f32.mrf.mxu0 }
 0x103   : > { %v757_v55 = vpop.f32.mrf.mxu3  ;;  %v729_v56 = vadd.f32 %v728_v54, %v700_v53  ;;  %v701_v58 = vpop.f32.mrf.mxu1 }
 0x104   : > { %v702_v62 = vadd.f32 %v701_v58, %v672_v57 }
 0x105   : > { %v758_v60 = vadd.f32 %v757_v55, %v729_v56 }
 0x107   : > { %v774_v61 = vadd.f32 %v758_v60, %v298_v59 }
 0x109   : > { %782 = vst [vmem:[#allocation2 + $0x18] sm:$0xff] %v774_v61 }
 0x10a   : > { %v730_v63 = vpop.f32.mrf.mxu2  ;;  %v675_v2 = vpop.f32.mrf.mxu0 }
 0x10b   : > { %v759_v0 = vpop.f32.mrf.mxu3  ;;  %v731_v1 = vadd.f32 %v730_v63, %v702_v62  ;;  %v704_v3 = vpop.f32.mrf.mxu1 }
 0x10c   : > { %v705_v7 = vadd.f32 %v704_v3, %v675_v2 }
 0x10d   : > { %v760_v5 = vadd.f32 %v759_v0, %v731_v1 }
 0x10f   : > { %v775_v6 = vadd.f32 %v760_v5, %v299_v4 }
 0x111   : > { %783 = vst [vmem:[#allocation2 + $0x10] sm:$0xff] %v775_v6 }
 0x112   : > { %v733_v8 = vpop.f32.mrf.mxu2  ;;  %v677_v11 = vpop.f32.mrf.mxu0 }
 0x113   : > { %v762_v9 = vpop.f32.mrf.mxu3  ;;  %v734_v10 = vadd.f32 %v733_v8, %v705_v7  ;;  %v706_v12 = vpop.f32.mrf.mxu1 }
 0x114   : > { %v707_v16 = vadd.f32 %v706_v12, %v677_v11 }
 0x115   : > { %v763_v14 = vadd.f32 %v762_v9, %v734_v10 }
 0x117   : > { %v776_v15 = vadd.f32 %v763_v14, %v300_v13 }
 0x119   : > { %784 = vst [vmem:[#allocation2 + $0x8] sm:$0xff] %v776_v15 }
 0x11a   : > { %v735_v17 = vpop.f32.mrf.mxu2  ;;  %v680_v21 = vpop.f32.mrf.mxu0 }
 0x11b   : > { %v764_v18 = vpop.f32.mrf.mxu3  ;;  %v736_v19 = vadd.f32 %v735_v17, %v707_v16  ;;  %v709_v22 = vpop.f32.mrf.mxu1 }
 0x11c   : > { %v710_v25 = vadd.f32 %v709_v22, %v680_v21 }
 0x11d   : > { %v765_v23 = vadd.f32 %v764_v18, %v736_v19 }
 0x11f   : > { %v777_v24 = vadd.f32 %v765_v23, %v301_v20 }
 0x121   : > { %785 = vst [vmem:[#allocation2 + $0x20] sm:$0xff] %v777_v24 }
 0x122   : > { %v738_v26 = vpop.f32.mrf.mxu2  ;;  %v682_v31 = vpop.f32.mrf.mxu0 }
 0x123   : > { %v767_v27 = vpop.f32.mrf.mxu3  ;;  %v739_v28 = vadd.f32 %v738_v26, %v710_v25  ;;  %v711_v32 = vpop.f32.mrf.mxu1 }
 0x124   : > { %v712_v34 = vadd.f32 %v711_v32, %v682_v31 }
 0x125   : > { %v768_v30 = vadd.f32 %v767_v27, %v739_v28 }
 0x127   : > { %v778_v33 = vadd.f32 %v768_v30, %v302_v29 }
 0x129   : > { %786 = vst [vmem:[#allocation2 + $0x28] sm:$0xff] %v778_v33 }
 0x12a   : > { %v740_v35 = vpop.f32.mrf.mxu2 }
 0x12b   : > { %v741_v36 = vadd.f32 %v740_v35, %v712_v34  ;;  %v769_v38 = vpop.f32.mrf.mxu3 }
 0x12d   : > { %v770_v39 = vadd.f32 %v769_v38, %v741_v36  ;;  %791 = sbr.rel (%p1614_p5) target bundleno = 538 (0x21a), region = 67 }
 0x12f   : > { %v779_v40 = vadd.f32 %v770_v39, %v303_v37 }
 0x131   : > { %787 = vst [vmem:[#allocation2 + $0x38] sm:$0xff] %v779_v40 }
 0x132   : > { %v1646_v41 = vld [vmem:[%s2815_s2 + $0x178] sm:$0xff]  ;;  %v1645_v43 = vld [vmem:[%s2815_s2 + $0x170] sm:$0xff]  ;;  %v1644_v47 = vld [vmem:[%s2815_s2 + $0x168] sm:$0xff] }
 0x133   : > { %v890_v42 = vld [vmem:[%s2815_s2 + $0x78] sm:$0xff]  ;;  %1015 = vmatpush.msra.mxu2 %v1646_v41  ;;  %v889_v45 = vld [vmem:[%s2815_s2 + $0x70] sm:$0xff]  ;;  %v888_v49 = vld [vmem:[%s2815_s2 + $0x68] sm:$0xff] }
 0x134   : > { %891 = vmatpush.msra.mxu0 %v890_v42  ;;  %v1662_v44 = vld [vmem:[%s2815_s2 + $0x1f8] sm:$0xff]  ;;  %v1661_v48 = vld [vmem:[%s2815_s2 + $0x1f0] sm:$0xff]  ;;  %v1660_v51 = vld [vmem:[%s2815_s2 + $0x1e8] sm:$0xff] }
 0x135   : > { %v1630_v46 = vld [vmem:[%s2815_s2 + $0xf8] sm:$0xff]  ;;  %1055 = vmatpush.msra.mxu3 %v1662_v44  ;;  %1016 = vmatpush.msra.mxu2 %v1645_v43  ;;  %v1629_v50 = vld [vmem:[%s2815_s2 + $0xf0] sm:$0xff]  ;;  %v1643_v52 = vld [vmem:[%s2815_s2 + $0x160] sm:$0xff] }
 0x136   : > { %932 = vmatpush.msra.mxu1 %v1630_v46  ;;  %892 = vmatpush.msra.mxu0 %v889_v45  ;;  %v887_v53 = vld [vmem:[%s2815_s2 + $0x60] sm:$0xff]  ;;  %v1628_v54 = vld [vmem:[%s2815_s2 + $0xe8] sm:$0xff]  ;;  %v1642_v57 = vld [vmem:[%s2815_s2 + $0x158] sm:$0xff] }
 0x137   : > { %1056 = vmatpush.msra.mxu3 %v1661_v48  ;;  %1017 = vmatpush.msra.mxu2 %v1644_v47  ;;  %v1659_v55 = vld [vmem:[%s2815_s2 + $0x1e0] sm:$0xff]  ;;  %v886_v58 = vld [vmem:[%s2815_s2 + $0x58] sm:$0xff]  ;;  %v1641_v61 = vld [vmem:[%s2815_s2 + $0x150] sm:$0xff] }
 0x138   : > { %933 = vmatpush.msra.mxu1 %v1629_v50  ;;  %893 = vmatpush.msra.mxu0 %v888_v49  ;;  %v1627_v56 = vld [vmem:[%s2815_s2 + $0xe0] sm:$0xff]  ;;  %v1658_v59 = vld [vmem:[%s2815_s2 + $0x1d8] sm:$0xff]  ;;  %v885_v62 = vld [vmem:[%s2815_s2 + $0x50] sm:$0xff] }
 0x139   : > { %1057 = vmatpush.msra.mxu3 %v1660_v51  ;;  %1018 = vmatpush.msra.mxu2 %v1643_v52  ;;  %v1626_v60 = vld [vmem:[%s2815_s2 + $0xd8] sm:$0xff]  ;;  %v1657_v63 = vld [vmem:[%s2815_s2 + $0x1d0] sm:$0xff]  ;;  %v1640_v1 = vld [vmem:[%s2815_s2 + $0x148] sm:$0xff] }
 0x13a   : > { %934 = vmatpush.msra.mxu1 %v1628_v54  ;;  %894 = vmatpush.msra.mxu0 %v887_v53  ;;  %v1625_v0 = vld [vmem:[%s2815_s2 + $0xd0] sm:$0xff]  ;;  %v884_v2 = vld [vmem:[%s2815_s2 + $0x48] sm:$0xff]  ;;  %v1639_v5 = vld [vmem:[%s2815_s2 + $0x140] sm:$0xff] }
 0x13b   : > { %1058 = vmatpush.msra.mxu3 %v1659_v55  ;;  %1019 = vmatpush.msra.mxu2 %v1642_v57  ;;  %v1656_v3 = vld [vmem:[%s2815_s2 + $0x1c8] sm:$0xff]  ;;  %v883_v6 = vld [vmem:[%s2815_s2 + $0x40] sm:$0xff]  ;;  %v1638_v9 = vld [vmem:[%s2815_s2 + $0x138] sm:$0xff] }
 0x13c   : > { %935 = vmatpush.msra.mxu1 %v1627_v56  ;;  %895 = vmatpush.msra.mxu0 %v886_v58  ;;  %v1624_v4 = vld [vmem:[%s2815_s2 + $0xc8] sm:$0xff]  ;;  %v1655_v7 = vld [vmem:[%s2815_s2 + $0x1c0] sm:$0xff]  ;;  %v882_v10 = vld [vmem:[%s2815_s2 + $0x38] sm:$0xff] }
 0x13d   : > { %1059 = vmatpush.msra.mxu3 %v1658_v59  ;;  %1020 = vmatpush.msra.mxu2 %v1641_v61  ;;  %v1623_v8 = vld [vmem:[%s2815_s2 + $0xc0] sm:$0xff]  ;;  %v1654_v11 = vld [vmem:[%s2815_s2 + $0x1b8] sm:$0xff]  ;;  %v1637_v13 = vld [vmem:[%s2815_s2 + $0x130] sm:$0xff] }
 0x13e   : > { %936 = vmatpush.msra.mxu1 %v1626_v60  ;;  %896 = vmatpush.msra.mxu0 %v885_v62  ;;  %v1622_v12 = vld [vmem:[%s2815_s2 + $0xb8] sm:$0xff]  ;;  %v881_v14 = vld [vmem:[%s2815_s2 + $0x30] sm:$0xff]  ;;  %v1636_v17 = vld [vmem:[%s2815_s2 + $0x128] sm:$0xff] }
 0x13f   : > { %1060 = vmatpush.msra.mxu3 %v1657_v63  ;;  %1021 = vmatpush.msra.mxu2 %v1640_v1  ;;  %v1653_v15 = vld [vmem:[%s2815_s2 + $0x1b0] sm:$0xff]  ;;  %v880_v18 = vld [vmem:[%s2815_s2 + $0x28] sm:$0xff]  ;;  %v1635_v21 = vld [vmem:[%s2815_s2 + $0x120] sm:$0xff] }
 0x140   : > { %937 = vmatpush.msra.mxu1 %v1625_v0  ;;  %897 = vmatpush.msra.mxu0 %v884_v2  ;;  %v1621_v16 = vld [vmem:[%s2815_s2 + $0xb0] sm:$0xff]  ;;  %v1652_v19 = vld [vmem:[%s2815_s2 + $0x1a8] sm:$0xff]  ;;  %v879_v22 = vld [vmem:[%s2815_s2 + $0x20] sm:$0xff] }
 0x141   : > { %1061 = vmatpush.msra.mxu3 %v1656_v3  ;;  %1022 = vmatpush.msra.mxu2 %v1639_v5  ;;  %v1620_v20 = vld [vmem:[%s2815_s2 + $0xa8] sm:$0xff]  ;;  %v1651_v23 = vld [vmem:[%s2815_s2 + $0x1a0] sm:$0xff]  ;;  %v1634_v25 = vld [vmem:[%s2815_s2 + $0x118] sm:$0xff] }
 0x142   : > { %938 = vmatpush.msra.mxu1 %v1624_v4  ;;  %898 = vmatpush.msra.mxu0 %v883_v6  ;;  %v1619_v24 = vld [vmem:[%s2815_s2 + $0xa0] sm:$0xff]  ;;  %v878_v26 = vld [vmem:[%s2815_s2 + $0x18] sm:$0xff]  ;;  %v1633_v29 = vld [vmem:[%s2815_s2 + $0x110] sm:$0xff] }
 0x143   : > { %1062 = vmatpush.msra.mxu3 %v1655_v7  ;;  %1023 = vmatpush.msra.mxu2 %v1638_v9  ;;  %v1650_v27 = vld [vmem:[%s2815_s2 + $0x198] sm:$0xff]  ;;  %v877_v30 = vld [vmem:[%s2815_s2 + $0x10] sm:$0xff]  ;;  %v1632_v33 = vld [vmem:[%s2815_s2 + $0x108] sm:$0xff] }
 0x144   : > { %939 = vmatpush.msra.mxu1 %v1623_v8  ;;  %899 = vmatpush.msra.mxu0 %v882_v10  ;;  %v1618_v28 = vld [vmem:[%s2815_s2 + $0x98] sm:$0xff]  ;;  %v1649_v31 = vld [vmem:[%s2815_s2 + $0x190] sm:$0xff]  ;;  %v876_v34 = vld [vmem:[%s2815_s2 + $0x8] sm:$0xff] }
 0x145   : > { %1063 = vmatpush.msra.mxu3 %v1654_v11  ;;  %1024 = vmatpush.msra.mxu2 %v1637_v13  ;;  %v1617_v32 = vld [vmem:[%s2815_s2 + $0x90] sm:$0xff]  ;;  %v1648_v35 = vld [vmem:[%s2815_s2 + $0x188] sm:$0xff]  ;;  %v1631_v37 = vld [vmem:[%s2815_s2 + $0x100] sm:$0xff] }
 0x146   : > { %940 = vmatpush.msra.mxu1 %v1622_v12  ;;  %900 = vmatpush.msra.mxu0 %v881_v14  ;;  %v1616_v36 = vld [vmem:[%s2815_s2 + $0x88] sm:$0xff]  ;;  %v875_v38 = vld [vmem:[%s2815_s2] sm:$0xff]  ;;  %v1710_v39 = vld [vmem:[%s2815_s2 + $0x378] sm:$0xff] }
 0x147   : > { %1064 = vmatpush.msra.mxu3 %v1653_v15  ;;  %1025 = vmatpush.msra.mxu2 %v1636_v17  ;;  %v1647_v40 = vld [vmem:[%s2815_s2 + $0x180] sm:$0xff]  ;;  %v1678_v41 = vld [vmem:[%s2815_s2 + $0x278] sm:$0xff]  ;;  %v1709_v43 = vld [vmem:[%s2815_s2 + $0x370] sm:$0xff] }
 0x148   : > { %941 = vmatpush.msra.mxu1 %v1621_v16  ;;  %901 = vmatpush.msra.mxu0 %v880_v18  ;;  %v1726_v42 = vld [vmem:[%s2815_s2 + $0x3f8] sm:$0xff]  ;;  %v1615_v44 = vld [vmem:[%s2815_s2 + $0x80] sm:$0xff]  ;;  %v1677_v45 = vld [vmem:[%s2815_s2 + $0x270] sm:$0xff] }
 0x149   : > { %1065 = vmatpush.msra.mxu3 %v1652_v19  ;;  %1026 = vmatpush.msra.mxu2 %v1635_v21  ;;  %v1694_v46 = vld [vmem:[%s2815_s2 + $0x2f8] sm:$0xff]  ;;  %v1708_v47 = vld [vmem:[%s2815_s2 + $0x368] sm:$0xff]  ;;  %v1725_v48 = vld [vmem:[%s2815_s2 + $0x3f0] sm:$0xff] }
 0x14a   : > { %942 = vmatpush.msra.mxu1 %v1620_v20  ;;  %902 = vmatpush.msra.mxu0 %v879_v22  ;;  %v1676_v49 = vld [vmem:[%s2815_s2 + $0x268] sm:$0xff]  ;;  %v1693_v50 = vld [vmem:[%s2815_s2 + $0x2f0] sm:$0xff]  ;;  %v1707_v51 = vld [vmem:[%s2815_s2 + $0x360] sm:$0xff] }
 0x14b   : > { %1066 = vmatpush.msra.mxu3 %v1651_v23  ;;  %1027 = vmatpush.msra.mxu2 %v1634_v25  ;;  %v1724_v52 = vld [vmem:[%s2815_s2 + $0x3e8] sm:$0xff]  ;;  %v1675_v53 = vld [vmem:[%s2815_s2 + $0x260] sm:$0xff]  ;;  %v1706_v55 = vld [vmem:[%s2815_s2 + $0x358] sm:$0xff] }
 0x14c   : > { %943 = vmatpush.msra.mxu1 %v1619_v24  ;;  %903 = vmatpush.msra.mxu0 %v878_v26  ;;  %v1692_v54 = vld [vmem:[%s2815_s2 + $0x2e8] sm:$0xff]  ;;  %v2439_v56 = vld [vmem:[#allocation2 + $0x30] sm:$0xff]  ;;  %v2441_v57 = vld [vmem:[#allocation2] sm:$0xff] }
 0x14d   : > { %1067 = vmatpush.msra.mxu3 %v1650_v27  ;;  %1028 = vmatpush.msra.mxu2 %v1633_v29  ;;  %v2443_v58 = vld [vmem:[#allocation2 + $0x18] sm:$0xff]  ;;  %v1723_v59 = vld [vmem:[%s2815_s2 + $0x3e0] sm:$0xff]  ;;  %v2450_v61 = vld [vmem:[#allocation2 + $0x10] sm:$0xff]  ;;  %v802_v63 = vrot.slane %v2439_v56, 1  ;;  %v805_v0 = vrot.slane %v2439_v56, 2  ;;  %v953_v18 = vrot.slane %v2441_v57, 4 }
 0x14e   : > { %944 = vmatpush.msra.mxu1 %v1618_v28  ;;  %904 = vmatpush.msra.mxu0 %v877_v30  ;;  %v810_v60 = vmax.f32 %v2443_v58, %v2441_v57  ;;  %v2452_v62 = vld [vmem:[#allocation2 + $0x8] sm:$0xff]  ;;  %v1674_v1 = vld [vmem:[%s2815_s2 + $0x258] sm:$0xff]  ;;  %v1691_v2 = vld [vmem:[%s2815_s2 + $0x2e0] sm:$0xff]  ;;  %v2491_v17 = vrot.slane %v2443_v58, 1  ;;  %v2502_v22 = vrot.slane %v2450_v61, 1  ;;  %v956_v23 = vrot.slane %v2441_v57, 5 }
 0x14f   : > { %1068 = vmatpush.msra.mxu3 %v1649_v31  ;;  %1029 = vmatpush.msra.mxu2 %v1632_v33  ;;  %v1705_v3 = vld [vmem:[%s2815_s2 + $0x350] sm:$0xff]  ;;  %v1081_v4 = vmax.f32 %v2452_v62, %v2450_v61  ;;  %v1722_v5 = vld [vmem:[%s2815_s2 + $0x3d8] sm:$0xff]  ;;  %v2471_v7 = vld [vmem:[#allocation2 + $0x20] sm:$0xff]  ;;  %v804_v9 = vmax.f32 %v2439_v56, %v802_v63  ;;  %v2513_v27 = vrot.slane %v2443_v58, 2  ;;  %v959_v29 = vrot.slane %v2441_v57, 6 }
 0x150   : > { %945 = vmatpush.msra.mxu1 %v1617_v32  ;;  %905 = vmatpush.msra.mxu0 %v876_v34  ;;  %v813_v6 = vmax.f32 %v810_v60, %v2450_v61  ;;  %v2473_v8 = vld [vmem:[#allocation2 + $0x28] sm:$0xff]  ;;  %v1673_v10 = vld [vmem:[%s2815_s2 + $0x250] sm:$0xff]  ;;  %v1690_v11 = vld [vmem:[%s2815_s2 + $0x2d8] sm:$0xff]  ;;  %v819_v32 = vrot.slane %v2441_v57, 1  ;;  %v2525_v34 = vrot.slane %v2450_v61, 2 }
 0x151   : > { %1069 = vmatpush.msra.mxu3 %v1648_v35  ;;  %1030 = vmatpush.msra.mxu2 %v1631_v37  ;;  %v1082_v12 = vmax.f32 %v1081_v4, %v2471_v7  ;;  %v1704_v13 = vld [vmem:[%s2815_s2 + $0x348] sm:$0xff]  ;;  %v1721_v14 = vld [vmem:[%s2815_s2 + $0x3d0] sm:$0xff]  ;;  %v807_v16 = vmax.f32 %v804_v9, %v805_v0  ;;  %v1703_v24 = vld [vmem:[%s2815_s2 + $0x340] sm:$0xff]  ;;  %v2584_v9 = vrot.slane %v2471_v7, 1 }
 0x152   : > { %946 = vmatpush.msra.mxu1 %v1616_v36  ;;  %906 = vmatpush.msra.mxu0 %v875_v38  ;;  %v816_v15 = vmax.f32 %v813_v6, %v2452_v62  ;;  %v1672_v19 = vld [vmem:[%s2815_s2 + $0x248] sm:$0xff]  ;;  %v1689_v20 = vld [vmem:[%s2815_s2 + $0x2d0] sm:$0xff]  ;;  %v1671_v30 = vld [vmem:[%s2815_s2 + $0x240] sm:$0xff] }
 0x153   : > { %1247 = vmatpush.msrb.mxu2 %v1710_v39  ;;  %1070 = vmatpush.msra.mxu3 %v1647_v40  ;;  %v1083_v21 = vmax.f32 %v1082_v12, %v2473_v8  ;;  %v1720_v25 = vld [vmem:[%s2815_s2 + $0x3c8] sm:$0xff]  ;;  %v955_v28 = vmax.f32 %v807_v16, %v953_v18  ;;  %v1702_v35 = vld [vmem:[%s2815_s2 + $0x338] sm:$0xff]  ;;  %v1719_v36 = vld [vmem:[%s2815_s2 + $0x3c0] sm:$0xff]  ;;  %v968_v39 = vrot.slane %v2450_v61, 4  ;;  %v1076_v40 = vmax.f32 %v2443_v58, %v2491_v17 }
 0x154   : > { %1135 = vmatpush.msrb.mxu0 %v1678_v41  ;;  %947 = vmatpush.msra.mxu1 %v1615_v44  ;;  %v817_v26 = vmax.f32 %v816_v15, %v2471_v7  ;;  %v1688_v31 = vld [vmem:[%s2815_s2 + $0x2c8] sm:$0xff]  ;;  %v1670_v41 = vld [vmem:[%s2815_s2 + $0x238] sm:$0xff]  ;;  %v1717_v63 = vld [vmem:[%s2815_s2 + $0x3b0] sm:$0xff]  ;;  %v2600_v18 = vrot.slane %v2471_v7, 2 }
 0x155   : > { %1287 = vmatpush.msrb.mxu3 %v1726_v42  ;;  %1248 = vmatpush.msrb.mxu2 %v1709_v43  ;;  %v1084_v33 = vmax.f32 %v1083_v21, %v2502_v22  ;;  %v958_v38 = vmax.f32 %v955_v28, %v956_v23  ;;  %v1687_v42 = vld [vmem:[%s2815_s2 + $0x2c0] sm:$0xff]  ;;  %v822_v43 = vrot.slane %v2441_v57, 2  ;;  %v1700_v60 = vld [vmem:[%s2815_s2 + $0x328] sm:$0xff] }
 0x156   : > { %1136 = vmatpush.msrb.mxu0 %v1677_v45  ;;  %1176 = vmatpush.msrb.mxu1 %v1694_v46  ;;  %v821_v37 = vmax.f32 %v817_v26, %v807_v16  ;;  %v2545_v45 = vrot.slane %v2452_v62, 1  ;;  %v833_v46 = vrot.slane %v2443_v58, 4  ;;  %v1668_v4 = vld [vmem:[%s2815_s2 + $0x228] sm:$0xff]  ;;  %v861_v26 = vrot.slane %v2452_v62, 5 }
 0x157   : > { %1249 = vmatpush.msrb.mxu2 %v1708_v47  ;;  %1288 = vmatpush.msrb.mxu3 %v1725_v48  ;;  %v1085_v44 = vmax.f32 %v1084_v33, %v2525_v34  ;;  %v1701_v47 = vld [vmem:[%s2815_s2 + $0x330] sm:$0xff]  ;;  %v1718_v48 = vld [vmem:[%s2815_s2 + $0x3b8] sm:$0xff]  ;;  %v1716_v12 = vld [vmem:[%s2815_s2 + $0x3a8] sm:$0xff]  ;;  %v864_v33 = vrot.slane %v2452_v62, 6 }
 0x158   : > { %1137 = vmatpush.msrb.mxu0 %v1676_v49  ;;  %1177 = vmatpush.msrb.mxu1 %v1693_v50  ;;  %v824_v49 = vmax.f32 %v821_v37, %v819_v32  ;;  %v961_v50 = vmax.f32 %v958_v38, %v959_v29 }
 0x159   : > { %1250 = vmatpush.msrb.mxu2 %v1707_v51  ;;  %1289 = vmatpush.msrb.mxu3 %v1724_v52  ;;  %v971_v51 = vrot.slane %v2450_v61, 5  ;;  %v1077_v52 = vmax.f32 %v1076_v40, %v2513_v27 }
 0x15a   : > { %1138 = vmatpush.msrb.mxu0 %v1675_v53  ;;  %1178 = vmatpush.msrb.mxu1 %v1692_v54  ;;  %v1669_v53 = vld [vmem:[%s2815_s2 + $0x230] sm:$0xff]  ;;  %v1686_v54 = vld [vmem:[%s2815_s2 + $0x2b8] sm:$0xff]  ;;  %v825_v0 = vmax.f32 %v824_v49, %v822_v43  ;;  %v1667_v49 = vld [vmem:[%s2815_s2 + $0x220] sm:$0xff] }
 0x15b   : > { %1251 = vmatpush.msrb.mxu2 %v1706_v55  ;;  %1290 = vmatpush.msrb.mxu3 %v1723_v59  ;;  %v1086_v55 = vmax.f32 %v1085_v44, %v2545_v45  ;;  %v2564_v59 = vrot.slane %v2452_v62, 2 }
 0x15c   : > { %1139 = vmatpush.msrb.mxu0 %v1674_v1  ;;  %1179 = vmatpush.msrb.mxu1 %v1691_v2  ;;  %v962_v1 = vmax.f32 %v961_v50, %v2441_v57  ;;  %v974_v2 = vrot.slane %v2450_v61, 6  ;;  %v836_v57 = vrot.slane %v2443_v58, 5  ;;  %v1698_v50 = vld [vmem:[%s2815_s2 + $0x318] sm:$0xff] }
 0x15d   : > { %1252 = vmatpush.msrb.mxu2 %v1705_v3  ;;  %1291 = vmatpush.msrb.mxu3 %v1722_v5  ;;  %v1197_v3 = vmax.f32 %v1077_v52, %v968_v39  ;;  %v1685_v5 = vld [vmem:[%s2815_s2 + $0x2b0] sm:$0xff]  ;;  %v1087_v6 = vmax.f32 %v1086_v55, %v2564_v59  ;;  %v1666_v55 = vld [vmem:[%s2815_s2 + $0x218] sm:$0xff] }
 0x15e   : > { %1140 = vmatpush.msrb.mxu0 %v1673_v10  ;;  %1180 = vmatpush.msrb.mxu1 %v1690_v11  ;;  %v1078_v10 = vmax.f32 %v1077_v52, %v833_v46  ;;  %v1699_v11 = vld [vmem:[%s2815_s2 + $0x320] sm:$0xff]  ;;  %v2642_v52 = vld [vmem:[#allocation2 + $0x38] sm:$0xff] }
 0x15f   : > { %1253 = vmatpush.msrb.mxu2 %v1704_v13  ;;  %1292 = vmatpush.msrb.mxu3 %v1721_v14  ;;  %v829_v13 = vmax.f32 %v825_v0, %v2491_v17  ;;  %v963_v14 = vmax.f32 %v962_v1, %v819_v32  ;;  %v1198_v15 = vmax.f32 %v1197_v3, %v971_v51  ;;  %v808_v3 = vrot.slane %v2439_v56, 4 }
 0x160   : > { %1141 = vmatpush.msrb.mxu0 %v1672_v19  ;;  %1181 = vmatpush.msrb.mxu1 %v1689_v20  ;;  %v1088_v16 = vmax.f32 %v1087_v6, %v2584_v9  ;;  %v858_v19 = vrot.slane %v2452_v62, 4  ;;  %v1079_v28 = vmax.f32 %v1078_v10, %v836_v57  ;;  %v1665_v6 = vld [vmem:[%s2815_s2 + $0x210] sm:$0xff]  ;;  %v1682_v10 = vld [vmem:[%s2815_s2 + $0x298] sm:$0xff] }
 0x161   : > { %1254 = vmatpush.msrb.mxu2 %v1703_v24  ;;  %1293 = vmatpush.msrb.mxu3 %v1720_v25  ;;  %v832_v20 = vmax.f32 %v829_v13, %v2513_v27  ;;  %v964_v21 = vmax.f32 %v963_v14, %v822_v43  ;;  %v1199_v23 = vmax.f32 %v1198_v15, %v974_v2  ;;  %v839_v25 = vrot.slane %v2443_v58, 6 }
 0x162   : > { %1142 = vmatpush.msrb.mxu0 %v1671_v30  ;;  %1182 = vmatpush.msrb.mxu1 %v1688_v31  ;;  %v1089_v24 = vmax.f32 %v1088_v16, %v2600_v18  ;;  %v1095_v14 = vrot.slane %v2473_v8, 1 }
 0x163   : > { %1255 = vmatpush.msrb.mxu2 %v1702_v35  ;;  %1294 = vmatpush.msrb.mxu3 %v1719_v36  ;;  %v835_v29 = vmax.f32 %v832_v20, %v2502_v22  ;;  %v965_v30 = vmax.f32 %v964_v21, %v2443_v58  ;;  %v1200_v31 = vmax.f32 %v1199_v23, %v2450_v61  ;;  %v811_v21 = vrot.slane %v2439_v56, 5  ;;  %v1664_v23 = vld [vmem:[%s2815_s2 + $0x208] sm:$0xff] }
 0x164   : > { %1143 = vmatpush.msrb.mxu0 %v1670_v41  ;;  %1183 = vmatpush.msrb.mxu1 %v1687_v42  ;;  %v1090_v32 = vmax.f32 %v1089_v24, %v858_v19  ;;  %v1080_v40 = vmax.f32 %v1079_v28, %v839_v25  ;;  %v1681_v24 = vld [vmem:[%s2815_s2 + $0x290] sm:$0xff]  ;;  %v989_v28 = vrot.slane %v2471_v7, 6  ;;  %v1215_v58 = vrot.slane %v2642_v52, 4 }
 0x165   : > { %1256 = vmatpush.msrb.mxu2 %v1701_v47  ;;  %1295 = vmatpush.msrb.mxu3 %v1718_v48  ;;  %v838_v35 = vmax.f32 %v835_v29, %v2525_v34  ;;  %v966_v36 = vmax.f32 %v965_v30, %v2491_v17  ;;  %v1201_v37 = vmax.f32 %v1200_v31, %v2502_v22  ;;  %v814_v29 = vrot.slane %v2439_v56, 6  ;;  %v1712_v30 = vld [vmem:[%s2815_s2 + $0x388] sm:$0xff] }
 0x166   : > { %1144 = vmatpush.msrb.mxu0 %v1669_v53  ;;  %1184 = vmatpush.msrb.mxu1 %v1686_v54  ;;  %v1091_v38 = vmax.f32 %v1090_v32, %v861_v26  ;;  %v983_v53 = vrot.slane %v2471_v7, 4  ;;  %v1098_v32 = vrot.slane %v2473_v8, 2  ;;  %v1112_v56 = vrot.slane %v2642_v52, 1 }
 0x167   : > { %1257 = vmatpush.msrb.mxu2 %v1700_v60  ;;  %1296 = vmatpush.msrb.mxu3 %v1717_v63  ;;  %v841_v41 = vmax.f32 %v838_v35, %v2545_v45  ;;  %v967_v42 = vmax.f32 %v966_v36, %v2513_v27  ;;  %v1202_v43 = vmax.f32 %v1201_v37, %v2525_v34  ;;  %v1684_v27 = vld [vmem:[%s2815_s2 + $0x2a8] sm:$0xff]  ;;  %v1683_v60 = vld [vmem:[%s2815_s2 + $0x2a0] sm:$0xff] }
 0x168   : > { %1145 = vmatpush.msrb.mxu0 %v1668_v4  ;;  %1185 = vmatpush.msrb.mxu1 %v1685_v5  ;;  %v1092_v44 = vmax.f32 %v1091_v38, %v864_v33  ;;  %v1697_v4 = vld [vmem:[%s2815_s2 + $0x310] sm:$0xff]  ;;  %v1714_v5 = vld [vmem:[%s2815_s2 + $0x398] sm:$0xff] }
 0x169   : > { %1258 = vmatpush.msrb.mxu2 %v1699_v11  ;;  %1297 = vmatpush.msrb.mxu3 %v1716_v12  ;;  %v842_v47 = vmax.f32 %v841_v41, %v2564_v59  ;;  %v970_v17 = vmax.f32 %v967_v42, %v968_v39  ;;  %v1203_v48 = vmax.f32 %v1202_v43, %v2452_v62  ;;  %v1715_v39 = vld [vmem:[%s2815_s2 + $0x3a0] sm:$0xff]  ;;  %v1696_v11 = vld [vmem:[%s2815_s2 + $0x308] sm:$0xff]  ;;  %v1713_v12 = vld [vmem:[%s2815_s2 + $0x390] sm:$0xff] }
 0x16a   : > { %1146 = vmatpush.msrb.mxu0 %v1667_v49  ;;  %1186 = vmatpush.msrb.mxu1 %v1684_v27  ;;  %v1093_v54 = vmax.f32 %v1092_v44, %v1080_v40  ;;  %v1680_v43 = vld [vmem:[%s2815_s2 + $0x288] sm:$0xff]  ;;  %v1711_v44 = vld [vmem:[%s2815_s2 + $0x380] sm:$0xff] }
 0x16b   : > { %v846_v63 = vmax.f32 %v842_v47, %v2584_v9  ;;  %v973_v0 = vmax.f32 %v970_v17, %v971_v51  ;;  %v1204_v1 = vmax.f32 %v1203_v48, %v2545_v45  ;;  %1259 = vmatpush.msrb.mxu2 %v1698_v50  ;;  %1298 = vmatpush.msrb.mxu3 %v1715_v39  ;;  %v986_v51 = vrot.slane %v2471_v7, 5  ;;  %v1679_v47 = vld [vmem:[%s2815_s2 + $0x280] sm:$0xff] }
 0x16c   : > { %1147 = vmatpush.msrb.mxu0 %v1666_v55  ;;  %1187 = vmatpush.msrb.mxu1 %v1683_v60  ;;  %v1097_v13 = vmax.f32 %v1093_v54, %v2642_v52  ;;  %v1101_v55 = vrot.slane %v2473_v8, 4 }
 0x16d   : > { %v849_v15 = vmax.f32 %v846_v63, %v2600_v18  ;;  %v976_v16 = vmax.f32 %v973_v0, %v974_v2  ;;  %v1205_v20 = vmax.f32 %v1204_v1, %v2564_v59  ;;  %1260 = vmatpush.msrb.mxu2 %v1697_v4  ;;  %1299 = vmatpush.msrb.mxu3 %v1714_v5  ;;  %v1695_v2 = vld [vmem:[%s2815_s2 + $0x300] sm:$0xff]  ;;  %v1104_v5 = vrot.slane %v2473_v8, 5 }
 0x16e   : > { %1148 = vmatpush.msrb.mxu0 %v1665_v6  ;;  %1188 = vmatpush.msrb.mxu1 %v1682_v10  ;;  %v1100_v31 = vmax.f32 %v1097_v13, %v1095_v14 }
 0x16f   : > { %v977_v35 = vmax.f32 %v976_v16, %v2450_v61  ;;  %v1206_v36 = vmax.f32 %v1205_v20, %v983_v53  ;;  %v850_v37 = vmax.f32 %v849_v15, %v808_v3  ;;  %1261 = vmatpush.msrb.mxu2 %v1696_v11  ;;  %1300 = vmatpush.msrb.mxu3 %v1713_v12  ;;  %v1663_v61 = vld [vmem:[%s2815_s2 + $0x200] sm:$0xff]  ;;  %v1107_v12 = vrot.slane %v2473_v8, 6 }
 0x170   : > { %1149 = vmatpush.msrb.mxu0 %v1664_v23  ;;  %1189 = vmatpush.msrb.mxu1 %v1681_v24  ;;  %v1103_v38 = vmax.f32 %v1100_v31, %v1098_v32 }
 0x171   : > { %v978_v40 = vmax.f32 %v977_v35, %v2502_v22  ;;  %v1207_v41 = vmax.f32 %v1206_v36, %v986_v51  ;;  %v854_v42 = vmax.f32 %v850_v37, %v811_v21  ;;  %1262 = vmatpush.msrb.mxu2 %v1695_v2  ;;  %1301 = vmatpush.msrb.mxu3 %v1712_v30  ;;  %v1115_v22 = vrot.slane %v2642_v52, 2 }
 0x172   : > { %1150 = vmatpush.msrb.mxu0 %v1663_v61  ;;  %1190 = vmatpush.msrb.mxu1 %v1680_v43  ;;  %v1106_v27 = vmax.f32 %v1103_v38, %v1112_v56 }
 0x173   : > { %v979_v17 = vmax.f32 %v978_v40, %v2525_v34  ;;  %v1208_v48 = vmax.f32 %v1207_v41, %v989_v28  ;;  %v857_v49 = vmax.f32 %v854_v42, %v814_v29  ;;  %1302 = vmatpush.msrb.mxu3 %v1711_v44 }
 0x174   : > { %1191 = vmatpush.msrb.mxu1 %v1679_v47  ;;  %v1109_v0 = vmax.f32 %v1106_v27, %v1115_v22 }
 0x175   : > { %v980_v50 = vmax.f32 %v979_v17, %v2452_v62  ;;  %v1209_v39 = vmax.f32 %v1208_v48, %v2471_v7  ;;  %v860_v54 = vmax.f32 %v857_v49, %v833_v46 }
 0x176   : > { %v1110_v10 = vmax.f32 %v1109_v0, %v1101_v55 }
 0x177   : > { %v981_v60 = vmax.f32 %v980_v50, %v2545_v45  ;;  %v1210_v34 = vmax.f32 %v1209_v39, %v2584_v9  ;;  %v863_v63 = vmax.f32 %v860_v54, %v836_v57 }
 0x179   : > { %v982_v1 = vmax.f32 %v981_v60, %v2564_v59  ;;  %v1211_v3 = vmax.f32 %v1210_v34, %v2600_v18  ;;  %v866_v4 = vmax.f32 %v863_v63, %v839_v25  ;;  %v1218_v25 = vrot.slane %v2642_v52, 5 }
 0x17b   : > { %v985_v46 = vmax.f32 %v982_v1, %v983_v53  ;;  %v1212_v45 = vmax.f32 %v1211_v3, %v2473_v8  ;;  %v867_v6 = vmax.f32 %v866_v4, %v858_v19  ;;  %v1114_v19 = vmax.f32 %v1110_v10, %v1104_v5 }
 0x17d   : > { %v988_v57 = vmax.f32 %v985_v46, %v986_v51  ;;  %v871_v59 = vmax.f32 %v867_v6, %v861_v26  ;;  %v1213_v11 = vmax.f32 %v1212_v45, %v1095_v14  ;;  %v1221_v26 = vrot.slane %v2642_v52, 6 }
 0x17e   : > { %v1117_v23 = vmax.f32 %v1114_v19, %v1107_v12 }
 0x17f   : > { %v991_v53 = vmax.f32 %v988_v57, %v989_v28  ;;  %v874_v13 = vmax.f32 %v871_v59, %v864_v33  ;;  %v1214_v15 = vmax.f32 %v1213_v11, %v1098_v32 }
 0x180   : > { %v1174_v29 = vrot.slane %v1117_v23, 1 }
 0x181   : > { %v992_v16 = vmax.f32 %v991_v53, %v2471_v7  ;;  %907 = vmatmul.f32.vlgmr.msra.gmra.mxu0 %v874_v13  ;;  %v930_v51 = vrot.slane %v874_v13, 1  ;;  %v1217_v20 = vmax.f32 %v1214_v15, %v1215_v58 }
 0x183   : > { %v993_v14 = vmax.f32 %v992_v16, %v2584_v9  ;;  %948 = vmatmul.f32.vlgmr.msra.gmra.mxu1 %v930_v51  ;;  %v1220_v21 = vmax.f32 %v1217_v20, %v1218_v25 }
 0x185   : > { %v994_v8 = vmax.f32 %v993_v14, %v2600_v18  ;;  %v1223_v24 = vmax.f32 %v1220_v21, %v1221_v26  ;;  %v800_v18 = vld [vmem:[%s2816_s3] sm:$0x1] }
 0x187   : > { %v1013_v28 = vrot.slane %v994_v8, 4  ;;  %v1053_v62 = vrot.slane %v994_v8, 5  ;;  %v1224_v33 = vmax.f32 %v1223_v24, %v2642_v52 }
 0x189   : > { %1031 = vmatmul.f32.vlgmr.msra.gmra.mxu2 %v1013_v28  ;;  %1071 = vmatmul.f32.vlgmr.msra.gmra.mxu3 %v1053_v62  ;;  %v1225_v7 = vmax.f32 %v1224_v33, %v1112_v56 }
 0x18a   : > { %1151 = vmatmul.f32.vlgmr.msrb.gmra.mxu0 %v1117_v23 }
 0x18b   : > { %v1226_v2 = vmax.f32 %v1225_v7, %v1115_v22  ;;  %1192 = vmatmul.f32.vlgmr.msrb.gmra.mxu1 %v1174_v29 }
 0x18d   : > { %v1245_v9 = vrot.slane %v1226_v2, 4  ;;  %v1285_v30 = vrot.slane %v1226_v2, 5 }
 0x191   : > { %1263 = vmatmul.f32.vlgmr.msrb.gmra.mxu2 %v1245_v9  ;;  %1303 = vmatmul.f32.vlgmr.msrb.gmra.mxu3 %v1285_v30 }
 0x1fe   : > { %v908_v31 = vpop.f32.mrf.mxu0 }
 0x1ff   : > { %v911_v32 = vadd.f32 %v908_v31, %v800_v18 }
 0x200   : > { %v949_v35 = vpop.f32.mrf.mxu1 }
 0x201   : > { %v952_v36 = vadd.f32 %v949_v35, %v911_v32 }
 0x207   : > { %v1152_v56 = vpop.f32.mrf.mxu0 }
 0x208   : > { %v1193_v41 = vpop.f32.mrf.mxu1 }
 0x20c   : > { %v1032_v37 = vpop.f32.mrf.mxu2  ;;  %v1072_v38 = vpop.f32.mrf.mxu3 }
 0x20d   : > { %v1035_v52 = vadd.f32 %v1032_v37, %v952_v36 }
 0x20f   : > { %v1075_v40 = vadd.f32 %v1072_v38, %v1035_v52 }
 0x211   : > { %v1155_v42 = vadd.f32 %v1152_v56, %v1075_v40 }
 0x213   : > { %v1196_v61 = vadd.f32 %v1193_v41, %v1155_v42 }
 0x214   : > { %v1264_v43 = vpop.f32.mrf.mxu2  ;;  %v1304_v44 = vpop.f32.mrf.mxu3 }
 0x215   : > { %v1267_v22 = vadd.f32 %v1264_v43, %v1196_v61 }
 0x217   : > { %v1307_v47 = vadd.f32 %v1304_v44, %v1267_v22 }
 0x219   : > { %1308 = vst [vmem:[%s2134_s5] sm:$0x1] %v1307_v47 }
 0x21a PF: > { %s1318_s18 = scalar_lea.hbm %s2817_s4, %s1963_s21  ;;  %s1320_s13 = sshll.u32 %s2134_s5, 4  ;;  %s1321_s13 = int_to_ptr.vmem [resolvable:$true] %s1320_s13 }
 0x21b   : > { %s1322_s25 = sshll.u32 %s1318_s18, 4  ;;  %s1310_s26 = scalar_lea.sflag [#allocation5], %s275_s14  ;;  %s1323_s25 = int_to_ptr.hbm [resolvable:$true] %s1322_s25 }
 0x21c   : > { %s1879_s30 = sshra.s32 %s1323_s25, 4  ;;  %s1885_s20 = scalar_lea.hbm %s2817_s4, 2  ;;  %s1880_s30 = int_to_ptr.hbm [resolvable:$true] %s1879_s30 }
 0x21d   : > { %s1881_s8 = scalar_lea.hbm %s1880_s30, 1  ;;  %p1886_p10 = scmp.lt.s32.totalorder %s1880_s30, %s2817_s4 }
 0x21e   : > { %p1882_p6 = scmp.ne.s32.totalorder %s1880_s30, %s1881_s8  ;;  %p1887_p11 = scmp.lt.s32.totalorder %s1885_s20, %s1881_s8 }
 0x220   : > { %p1883_p8 = pnand %p1882_p6, %p2075_p7  ;;  %p1888_p13 = por %p1887_p11, %p1886_p10 }
 0x222   : > { %p1884_p9 = pneg %p1883_p8 }
 0x224   : > { %p1889_p0 = pnand %p1888_p13, %p1884_p9 }
 0x226   : > { %1892 = shalt.err (!%p1889_p0)
}
 0x227   : > { %1777 = dma.vmem_to_hbm [thread:$0]  (%p2075_p7), %s1321_s13, 16, %s1323_s25, %s1310_s26  }
 0x228 PF: > { %p1783_p1 = scmp.ge.s32.totalorder %s1975_s24, 2  ;;  %s1334_s21 = sand.u32 1, %s1939_s15  }
 0x229   : > { %s1335_s14 = scalar_lea.sflag [#allocation5], %s1334_s21 }
 0x22a   : > { %p1780_p2 = pnand %p1783_p1, %p2083_p12 }
 0x22c   : > { %p1781_p3 = pneg %p1780_p2 }
 0x22e   : > { %1934 = dma.done.wait (%p1781_p3), %s1335_s14, 16  }
 0x22f   : > { %1936 = vsyncadd (%p1781_p3), %s1335_s14, 4294967280  ;;  %s17_s24 = sadd.s32 1, %s1975_s24   ;;  %s2823_s15 = smov %s1943_s16 }
 0x230   : > { %p14_p4 = scmp.ge.s32.totalorder %s17_s24, 6   ;;  %s2824_s16 = smov %s1947_s17 }
 0x231   : > { %s2825_s17 = smov %s2088_s11  ;;  %s2826_s18 = smov %s1955_s19 }
 0x232   : > { %s2827_s19 = smov %s2091_s12  ;;  %s2828_s20 = smov %s1967_s22 }
 0x233   : > { %s2829_s21 = smov %s1971_s23  ;;  %s2830_s22 = smov %s2833_s27 }
 0x234   : > { %s2831_s23 = smov %s2837_s28  ;;  %16 = sbr.rel (!%p14_p4) target bundleno = 8 (0x8), region = 117 }
 0x239   :  { %1340 = vsyncpa [#allocation5], 1 }
 0x23a   :  { %1342 = vsyncpa [#allocation5 + $0x1], 1 }

</bundles_post_ra>
